<compile_context>
chip_gen: v7x
topology: tpu7x:2x2x1
jax: 0.10.0
libtpu: 0.0.40
codegen_flags: <defaults>
</compile_context>

<pallas_src>
import functools

import jax
import jax.numpy as jnp
import numpy as np
from jax.experimental import pallas as pl
from jax.experimental.pallas import tpu as pltpu

SIX = 6


# ----------------------------------------------------------------------------
# Mask construction (mirrors ConnectLayer.__init__).
# ----------------------------------------------------------------------------
def _build_connect_mask(input_r, input_depth, kernel_size, stride, output_depth):
    output_r_f = (input_r - kernel_size) / stride + 1
    assert float(output_r_f).is_integer(), "stride error"
    output_r = int(output_r_f)
    N = output_r * output_r * output_depth * SIX
    K = input_r * input_r * input_depth
    mask = np.zeros((N, K), dtype=np.float32)
    for i in range(output_r):
        for j in range(output_r):
            ij = np.zeros((input_r, input_r, input_depth), dtype=np.float32)
            ij[i * stride:i * stride + kernel_size,
               j * stride:j * stride + kernel_size, :] = 1.0
            ij = ij.reshape(-1)
            k_base = (i * output_r + j) * output_depth * SIX
            for k in range(output_depth * SIX):
                mask[k_base + k] = ij
    return mask, output_r


# ----------------------------------------------------------------------------
# Tile-size helpers.
# ----------------------------------------------------------------------------
def _row_tile(N, max_rows=512):
    """Largest multiple-of-8 divisor of N that is <= max_rows (else full N)."""
    for t in range(min(N, max_rows), 7, -8):
        if N % t == 0 and t % 8 == 0:
            return t
    return N


def _col_tile(N, target=512):
    """Lane-dense (multiple-of-128) divisor of N, preferring >= 2 grid steps."""
    cands = [t for t in range(128, N + 1, 128) if N % t == 0]
    if not cands:
        return N  # full dim (exempt from the 128 rule)
    multi = [t for t in cands if t <= target and N // t >= 2]
    if multi:
        return max(multi)
    small = [t for t in cands if t <= target]
    return max(small) if small else min(cands)


# ----------------------------------------------------------------------------
# Pass 1 (once per weight update): normalized, masked, exp'd weights.
# ----------------------------------------------------------------------------
def _prepare_kernel(w_ref, m_ref, o_ref):
    # w_ref, m_ref, o_ref: (tn, K)
    w = w_ref[...].astype(jnp.float32)
    live = m_ref[...] > 0.0
    neg = jnp.float32(-1e30)
    wm = jnp.where(live, w, neg)                       # masked-out -> -1e30
    rowmax = jnp.max(wm, axis=-1, keepdims=True)       # max over LIVE entries
    e = jnp.exp(wm - rowmax)                           # masked-out underflows to 0
    s = jnp.sum(e, axis=-1, keepdims=True)
    o_ref[...] = e / s                                 # exact divide (one-time pass)


@functools.partial(jax.jit, static_argnames=("dtype",))
def _normalize_weights(connect_w, connect_mask, dtype):
    N, K = connect_w.shape
    tn = _row_tile(N)
    vmem_est = 3 * 2 * tn * K * 4
    vmem_limit = int(min(56 << 20, max(4 << 20, 2 * vmem_est)))
    w_norm = pl.pallas_call(
        _prepare_kernel,
        out_shape=jax.ShapeDtypeStruct((N, K), jnp.float32),
        grid_spec=pltpu.PrefetchScalarGridSpec(
            num_scalar_prefetch=0,
            grid=(N // tn,),
            in_specs=[
                pl.BlockSpec((tn, K), lambda i: (i, 0)),
                pl.BlockSpec((tn, K), lambda i: (i, 0)),
            ],
            out_specs=pl.BlockSpec((tn, K), lambda i: (i, 0)),
        ),
        compiler_params=pltpu.CompilerParams(
            dimension_semantics=("parallel",),
            vmem_limit_bytes=vmem_limit),
        cost_estimate=pl.CostEstimate(
            flops=4 * N * K, transcendentals=N * K, bytes_accessed=3 * N * K * 4),
    )(connect_w.astype(jnp.float32), connect_mask.astype(jnp.float32))
    # One-time layout change: store (K, N) so the forward streams lane-dense
    # (K, tn) tiles with the canonical contraction (no transpose per forward).
    return w_norm.T.astype(dtype)


def prepare_connect_weights(connect_w, connect_mask, dtype=jnp.bfloat16):
    """Once per weight update: normalize_rows(exp(W) * M), stored (K, N)."""
    mask_np = np.asarray(connect_mask)
    assert (mask_np.sum(axis=-1) > 0).all(), \
        "connect_mask has a fully-masked row (row normalization would be 0/0)"
    return _normalize_weights(jnp.asarray(connect_w), jnp.asarray(connect_mask),
                              dtype=dtype)


# ----------------------------------------------------------------------------
# Pass 2 (per forward call): pure streaming matmul  out = x @ Wn_T.
# ----------------------------------------------------------------------------
def _connect_matmul_kernel(x_ref, w_ref, o_ref):
    # x_ref: (Bp, K) resident; w_ref: (K, tn) streamed; o_ref: (Bp, tn) f32
    o_ref[...] = jnp.dot(x_ref[...], w_ref[...],
                         preferred_element_type=jnp.float32).astype(o_ref.dtype)


@functools.partial(jax.jit, static_argnames=("tn",))
def connect_forward(x, w_norm_t, tn=None):
    """x: (B, K); w_norm_t: (K, N) from prepare_connect_weights."""
    B, K = x.shape
    K2, N = w_norm_t.shape
    assert K == K2
    if tn is None:
        tn = _col_tile(N)
    assert N % tn == 0

    # Pad batch to a sublane multiple of 8 (pad rows are zeros, sliced off).
    Bp = max(8, ((B + 7) // 8) * 8)
    if Bp > B:
        x = jnp.concatenate([x, jnp.zeros((Bp - B, K), x.dtype)], axis=0)
    # MXU native mode: run both operands in the streamed weight dtype.
    x = x.astype(w_norm_t.dtype)

    xb = jnp.dtype(x.dtype).itemsize
    wb = jnp.dtype(w_norm_t.dtype).itemsize
    # Count every buffer, double-buffered; cap below v7x's 64 MiB/TC.
    vmem_est = 2 * Bp * K * xb + 2 * K * tn * wb + 2 * Bp * tn * 4
    vmem_limit = int(min(56 << 20, max(4 << 20, 2 * vmem_est)))

    out = pl.pallas_call(
        _connect_matmul_kernel,
        out_shape=jax.ShapeDtypeStruct((Bp, N), jnp.float32),
        grid_spec=pltpu.PrefetchScalarGridSpec(
            num_scalar_prefetch=0,
            grid=(N // tn,),
            in_specs=[
                pl.BlockSpec((Bp, K), lambda i: (0, 0)),   # x resident
                pl.BlockSpec((K, tn), lambda i: (0, i)),   # weight tile stream
            ],
            out_specs=pl.BlockSpec((Bp, tn), lambda i: (0, i)),
        ),
        compiler_params=pltpu.CompilerParams(
            dimension_semantics=("parallel",),
            vmem_limit_bytes=vmem_limit),
        cost_estimate=pl.CostEstimate(
            flops=2 * Bp * N * K,
            transcendentals=0,
            bytes_accessed=K * N * wb + Bp * K * xb + Bp * N * 4),
    )(x, w_norm_t)
    return out[:B].reshape(B, -1, SIX)


# ----------------------------------------------------------------------------
# Pure-JAX reference mirroring the torch forward.
# ----------------------------------------------------------------------------
def connect_forward_ref(x, connect_w, connect_mask):
    w = jnp.exp(connect_w) * connect_mask
    w = w / jnp.sum(w, axis=-1, keepdims=True)
    y = x @ w.T
    return y.reshape(x.shape[0], -1, SIX)


if __name__ == "__main__":
    # Small config consistent with the module: output_r = (16 - 7) / 3 + 1 = 4
    input_r, input_depth, kernel_size, stride, output_depth = 16, 1, 7, 3, 4
    mask_np, output_r = _build_connect_mask(
        input_r, input_depth, kernel_size, stride, output_depth)

    K = input_r * input_r * input_depth            # 256
    N = output_r * output_r * output_depth * SIX   # 384
    B = 8

    key = jax.random.PRNGKey(0)
    kx, kw = jax.random.split(key)
    x = jax.random.normal(kx, (B, K), dtype=jnp.float32)
    # Module inits connect_w to zeros; use small deterministic values instead
    # so the exp / normalization path is exercised non-trivially.
    connect_w = 0.1 * jax.random.normal(kw, (N, K), dtype=jnp.float32)
    connect_mask = jnp.asarray(mask_np)

    ref = connect_forward_ref(x, connect_w, connect_mask)

    # f32 weight streaming.
    w_f32 = prepare_connect_weights(connect_w, connect_mask, dtype=jnp.float32)
    out = jax.block_until_ready(connect_forward(x, w_f32))
    assert out.shape == (B, N // SIX, SIX), out.shape
    np.testing.assert_allclose(np.asarray(out), np.asarray(ref),
                               rtol=1e-3, atol=1e-3)

    # bf16 weight streaming (default): halves HBM bytes of the (K, N) stream
    # and runs the MXU in native bf16 mode.
    w_bf16 = prepare_connect_weights(connect_w, connect_mask, dtype=jnp.bfloat16)
    out_bf16 = jax.block_until_ready(connect_forward(x, w_bf16))
    np.testing.assert_allclose(np.asarray(out_bf16), np.asarray(ref),
                               rtol=2e-2, atol=2e-2)

    print("KERNEL_OK")
</pallas_src>

<mosaic_0001>
module attributes {stable_mosaic.version = 11 : i64} {
  func.func @_prepare_kernel(%arg0: i32, %arg1: memref<384x256xf32, #tpu.memory_space<vmem>>, %arg2: memref<384x256xf32, #tpu.memory_space<vmem>>, %arg3: memref<384x256xf32, #tpu.memory_space<vmem>>) attributes {dimension_semantics = [#tpu.dimension_semantics<parallel>], iteration_bounds = array<i64: 1>, scalar_prefetch = 0 : i64, scratch_operands = 0 : i64, tpu.core_type = #tpu.core_type<tc>, window_params = [{transform_indices = @transform_0, window_bounds = array<i64: 384, 256>}, {transform_indices = @transform_1, window_bounds = array<i64: 384, 256>}, {transform_indices = @transform_2, window_bounds = array<i64: 384, 256>}]} {
    %c0 = arith.constant 0 : index
    %c0_0 = arith.constant 0 : index
    %0 = vector.load %arg1[%c0, %c0_0] : memref<384x256xf32, #tpu.memory_space<vmem>>, vector<384x256xf32>
    %c0_1 = arith.constant 0 : index
    %c0_2 = arith.constant 0 : index
    %1 = vector.load %arg2[%c0_1, %c0_2] : memref<384x256xf32, #tpu.memory_space<vmem>>, vector<384x256xf32>
    %cst = arith.constant 0.000000e+00 : f32
    %2 = vector.broadcast %cst : f32 to vector<384x256xf32>
    %3 = arith.cmpf ogt, %1, %2 : vector<384x256xf32>
    %cst_3 = arith.constant -1.000000e+30 : f32
    %4 = vector.broadcast %cst_3 : f32 to vector<384x256xf32>
    %5 = arith.select %3, %0, %4 : vector<384x256xi1>, vector<384x256xf32>
    %cst_4 = arith.constant dense<0xFF800000> : vector<384xf32>
    %6 = vector.multi_reduction <maximumf>, %5, %cst_4 [1] : vector<384x256xf32> to vector<384xf32>
    %7 = vector.shape_cast %6 : vector<384xf32> to vector<384x1xf32>
    %8 = vector.broadcast %7 : vector<384x1xf32> to vector<384x256xf32>
    %9 = arith.subf %5, %8 : vector<384x256xf32>
    %10 = math.exp %9 : vector<384x256xf32>
    %cst_5 = arith.constant dense<0.000000e+00> : vector<384xf32>
    %11 = vector.multi_reduction <add>, %10, %cst_5 [1] : vector<384x256xf32> to vector<384xf32>
    %12 = vector.shape_cast %11 : vector<384xf32> to vector<384x1xf32>
    %13 = vector.broadcast %12 : vector<384x1xf32> to vector<384x256xf32>
    %14 = arith.divf %10, %13 : vector<384x256xf32>
    %c0_6 = arith.constant 0 : index
    %c0_7 = arith.constant 0 : index
    %15 = vector.load %arg3[%c0_6, %c0_7] : memref<384x256xf32, #tpu.memory_space<vmem>>, vector<384x256xf32>
    tpu.vector_store %arg3[%c0_6, %c0_7], %14 {strides = array<i32>} : memref<384x256xf32, #tpu.memory_space<vmem>>, vector<384x256xf32>,
    return
  }
  func.func @transform_0(%arg0: i32) -> (i32, i32) {
    %c0_i32 = arith.constant 0 : i32
    %c0_i32_0 = arith.constant 0 : i32
    return %arg0, %c0_i32 : i32, i32
  }
  func.func @transform_1(%arg0: i32) -> (i32, i32) {
    %c0_i32 = arith.constant 0 : i32
    %c0_i32_0 = arith.constant 0 : i32
    return %arg0, %c0_i32 : i32, i32
  }
  func.func @transform_2(%arg0: i32) -> (i32, i32) {
    %c0_i32 = arith.constant 0 : i32
    %c0_i32_0 = arith.constant 0 : i32
    return %arg0, %c0_i32 : i32, i32
  }
}

</mosaic_0001>

<bundles_post_ra>
// kernel: _normalize_weights.1
= control target key start
LH: loop header
LB: loop body
LE: loop exit
PB: predicated region body
PF: predicated region fallthrough
CT: control target
= control target key end

     0   :  { %7 = vsyncpa [#allocation3], 0  ;;  %s2685_s0 = inlined_call_operand.hbm [shape: f32[384,256], index: 0, kind: input, shape index: {}]   ;;  %s2686_s1 = inlined_call_operand.hbm [shape: f32[384,256], index: 1, kind: input, shape index: {}]   ;;  %s2687_s2 = inlined_call_operand.vmem [shape: f32[384,256], index: 2, kind: output, shape index: {}]  }
   0x1   :  { %8 = vsyncpa [#allocation5], 0  ;;  %s1585_s9 = smov [#allocation2]   ;;  %s1537_s13 = scalar_lea.hbm %s2685_s0, 12288 }
   0x2   :  { %s14_s10 = sshll.u32 %s1585_s9, 4  ;;  %p1538_p0 = scmp.ne.s32.totalorder %s2685_s0, %s1537_s13  ;;  %s15_s10 = int_to_ptr.vmem [resolvable:$true] %s14_s10 }
   0x3   :  { %p1541_p1 = scmp.lt.u32.totalorder %s1537_s13, %s2685_s0 }
   0x5   :  { %p1543_p2 = pnand %p1541_p1, %p1538_p0 }
   0x7   :  { %1546 = shalt.err (!%p1543_p2)
}
   0x8   :  { %s1547_s18 = scalar_lea.vmem %s15_s10, 12288  ;;  %p1552_p4 = scmp.lt.s32.totalorder %s15_s10, %s15_s10 }
   0x9   :  { %p1548_p3 = scmp.ne.s32.totalorder %s15_s10, %s1547_s18  ;;  %p1553_p5 = scmp.lt.s32.totalorder %s1547_s18, %s1547_s18 }
   0xb   :  { %p1554_p6 = por %p1553_p5, %p1552_p4 }
   0xd   :  { %p1555_p7 = pnand %p1554_p6, %p1548_p3 }
   0xf   :  { %1558 = shalt.err (!%p1555_p7)
}
  0x10   :  { %s1586_s19 = smov 256   ;;  %s1587_s20 = smov 16  }
  0x11   :  { %20 = dma.hbm_to_vmem [thread:$0]  %s2685_s0, 12288, %s15_s10, [#allocation3], %s1586_s19, %s1586_s19, %s1587_s20  }
  0x12   :  { %s1588_s23 = smov [#allocation4]   ;;  %s1559_s27 = scalar_lea.hbm %s2686_s1, 12288 }
  0x13   :  { %s26_s24 = sshll.u32 %s1588_s23, 4  ;;  %p1560_p8 = scmp.ne.s32.totalorder %s2686_s1, %s1559_s27  ;;  %s27_s24 = int_to_ptr.vmem [resolvable:$true] %s26_s24 }
  0x14   :  { %p1563_p9 = scmp.lt.u32.totalorder %s1559_s27, %s2686_s1 }
  0x16   :  { %p1565_p10 = pnand %p1563_p9, %p1560_p8 }
  0x18   :  { %1568 = shalt.err (!%p1565_p10)
}
  0x19   :  { %s1569_s4 = scalar_lea.vmem %s27_s24, 12288  ;;  %p1574_p12 = scmp.lt.s32.totalorder %s27_s24, %s27_s24 }
  0x1a   :  { %p1570_p11 = scmp.ne.s32.totalorder %s27_s24, %s1569_s4  ;;  %p1575_p13 = scmp.lt.s32.totalorder %s1569_s4, %s1569_s4 }
  0x1c   :  { %p1576_p0 = por %p1575_p13, %p1574_p12 }
  0x1e   :  { %p1577_p1 = pnand %p1576_p0, %p1570_p11 }
  0x20   :  { %1580 = shalt.err (!%p1577_p1)
}
  0x21   :  { %32 = dma.hbm_to_vmem [thread:$0]  %s2686_s1, 12288, %s27_s24, [#allocation5], %s1586_s19, %s1586_s19, %s1587_s20  }
  0x22   :  { %1581 = dma.done.wait [#allocation3], 12288  }
  0x23   :  { %1582 = vsyncadd [#allocation3], 4294955008 }
  0x24   :  { %1583 = dma.done.wait [#allocation5], 12288  }
  0x25   :  { %1584 = vsyncadd [#allocation5], 4294955008  ;;  %v39_v0 = vld [vmem:[#allocation2] sm:$0xff]  ;;  %v40_v1 = vld [vmem:[#allocation2 + $0x8] sm:$0xff] }
  0x26   :  { %v135_v2 = vld [vmem:[#allocation4] sm:$0xff]  ;;  %v136_v3 = vld [vmem:[#allocation4 + $0x8] sm:$0xff]  ;;  %v41_v9 = vld [vmem:[#allocation2 + $0x10] sm:$0xff] }
  0x27   :  { %vm231_vm0 = vcmp.gt.f32.partialorder %v135_v2, 0.0  ;;  %v43_v4 = vld [vmem:[#allocation2 + $0x20] sm:$0xff]  ;;  %v44_v5 = vld [vmem:[#allocation2 + $0x28] sm:$0xff]  ;;  %vm232_vm1 = vcmp.gt.f32.partialorder %v136_v3, 0.0  ;;  %v42_v11 = vld [vmem:[#allocation2 + $0x18] sm:$0xff] }
  0x28   :  { %v1628_v6 = vsel %vm231_vm0, %v39_v0, -1e+30  ;;  %v139_v7 = vld [vmem:[#allocation4 + $0x20] sm:$0xff]  ;;  %v140_v8 = vld [vmem:[#allocation4 + $0x28] sm:$0xff]  ;;  %v1630_v10 = vsel %vm232_vm1, %v40_v1, -1e+30 }
  0x29   :  { %vm235_vm2 = vcmp.gt.f32.partialorder %v139_v7, 0.0  ;;  %vm236_vm3 = vcmp.gt.f32.partialorder %v140_v8, 0.0  ;;  %v137_v12 = vld [vmem:[#allocation4 + $0x10] sm:$0xff]  ;;  %v423_v13 = vmax.f32 %v1628_v6, %v1630_v10  ;;  %v138_v16 = vld [vmem:[#allocation4 + $0x18] sm:$0xff]  ;;  %v47_v24 = vld [vmem:[#allocation2 + $0x40] sm:$0xff] }
  0x2a   :  { %v1634_v14 = vsel %vm235_vm2, %v43_v4, -1e+30  ;;  %v1636_v15 = vsel %vm236_vm3, %v44_v5, -1e+30  ;;  %vm233_vm4 = vcmp.gt.f32.partialorder %v137_v12, 0.0  ;;  %vm234_vm5 = vcmp.gt.f32.partialorder %v138_v16, 0.0 }
  0x2b   :  { %v429_v17 = vmax.f32 %v1634_v14, %v1636_v15  ;;  %v1640_v18 = vsel %vm233_vm4, %v41_v9, -1e+30  ;;  %v45_v19 = vld [vmem:[#allocation2 + $0x30] sm:$0xff]  ;;  %v46_v20 = vld [vmem:[#allocation2 + $0x38] sm:$0xff]  ;;  %424 = vmax.xlane.f32.xlu0 %v423_v13  ;;  %v1642_v22 = vsel %vm234_vm5, %v42_v11, -1e+30 }
  0x2c   :  { %v141_v21 = vld [vmem:[#allocation4 + $0x30] sm:$0xff]  ;;  %v142_v23 = vld [vmem:[#allocation4 + $0x38] sm:$0xff]  ;;  %v48_v25 = vld [vmem:[#allocation2 + $0x48] sm:$0xff]  ;;  %v426_v26 = vmax.f32 %v1640_v18, %v1642_v22 }
  0x2d   :  { %vm237_vm6 = vcmp.gt.f32.partialorder %v141_v21, 0.0  ;;  %430 = vmax.xlane.f32.xlu1 %v429_v17  ;;  %vm238_vm7 = vcmp.gt.f32.partialorder %v142_v23, 0.0  ;;  %v143_v28 = vld [vmem:[#allocation4 + $0x40] sm:$0xff]  ;;  %v144_v29 = vld [vmem:[#allocation4 + $0x48] sm:$0xff]  ;;  %v49_v30 = vld [vmem:[#allocation2 + $0x50] sm:$0xff] }
  0x2e   :  { %v1646_v27 = vsel %vm237_vm6, %v45_v19, -1e+30  ;;  %v1648_v31 = vsel %vm238_vm7, %v46_v20, -1e+30  ;;  %vm239_vm8 = vcmp.gt.f32.partialorder %v143_v28, 0.0  ;;  %vm240_vm9 = vcmp.gt.f32.partialorder %v144_v29, 0.0 }
  0x2f   :  { %v50_v32 = vld [vmem:[#allocation2 + $0x58] sm:$0xff]  ;;  %v145_v33 = vld [vmem:[#allocation4 + $0x50] sm:$0xff]  ;;  %v432_v34 = vmax.f32 %v1646_v27, %v1648_v31  ;;  %v1652_v35 = vsel %vm239_vm8, %v47_v24, -1e+30  ;;  %v1654_v36 = vsel %vm240_vm9, %v48_v25, -1e+30  ;;  %427 = vmax.xlane.f32.xlu0 %v426_v26 }
  0x30   :  { %v146_v37 = vld [vmem:[#allocation4 + $0x58] sm:$0xff]  ;;  %vm241_vm10 = vcmp.gt.f32.partialorder %v145_v33, 0.0  ;;  %v435_v38 = vmax.f32 %v1652_v35, %v1654_v36  ;;  %v51_v40 = vld [vmem:[#allocation2 + $0x60] sm:$0xff]  ;;  %v52_v41 = vld [vmem:[#allocation2 + $0x68] sm:$0xff] }
  0x31   :  { %vm242_vm11 = vcmp.gt.f32.partialorder %v146_v37, 0.0  ;;  %v1658_v39 = vsel %vm241_vm10, %v49_v30, -1e+30  ;;  %v147_v42 = vld [vmem:[#allocation4 + $0x60] sm:$0xff]  ;;  %433 = vmax.xlane.f32.xlu1 %v432_v34  ;;  %v148_v44 = vld [vmem:[#allocation4 + $0x68] sm:$0xff]  ;;  %v53_v45 = vld [vmem:[#allocation2 + $0x70] sm:$0xff] }
  0x32   :  { %v1660_v43 = vsel %vm242_vm11, %v50_v32, -1e+30  ;;  %vm243_vm12 = vcmp.gt.f32.partialorder %v147_v42, 0.0  ;;  %v54_v46 = vld [vmem:[#allocation2 + $0x78] sm:$0xff]  ;;  %vm244_vm13 = vcmp.gt.f32.partialorder %v148_v44, 0.0  ;;  %v149_v49 = vld [vmem:[#allocation4 + $0x70] sm:$0xff] }
  0x33   :  { %v438_v47 = vmax.f32 %v1658_v39, %v1660_v43  ;;  %v1664_v48 = vsel %vm243_vm12, %v51_v40, -1e+30  ;;  %v150_v50 = vld [vmem:[#allocation4 + $0x78] sm:$0xff]  ;;  %v55_v51 = vld [vmem:[#allocation2 + $0x80] sm:$0xff]  ;;  %v1666_v52 = vsel %vm244_vm13, %v52_v41, -1e+30  ;;  %436 = vmax.xlane.f32.xlu0 %v435_v38 }
  0x34   :  { %vm245_vm14 = vcmp.gt.f32.partialorder %v149_v49, 0.0  ;;  %vm246_vm15 = vcmp.gt.f32.partialorder %v150_v50, 0.0  ;;  %v56_v53 = vld [vmem:[#allocation2 + $0x88] sm:$0xff]  ;;  %v151_v54 = vld [vmem:[#allocation4 + $0x80] sm:$0xff]  ;;  %v441_v55 = vmax.f32 %v1664_v48, %v1666_v52  ;;  %v57_v61 = vld [vmem:[#allocation2 + $0x90] sm:$0xff] }
  0x35   :  { %v1670_v56 = vsel %vm245_vm14, %v53_v45, -1e+30  ;;  %v1672_v57 = vsel %vm246_vm15, %v54_v46, -1e+30  ;;  %v152_v58 = vld [vmem:[#allocation4 + $0x88] sm:$0xff]  ;;  %vm247_vm0 = vcmp.gt.f32.partialorder %v151_v54, 0.0  ;;  %439 = vmax.xlane.f32.xlu1 %v438_v47 }
  0x36   :  { %v444_v59 = vmax.f32 %v1670_v56, %v1672_v57  ;;  %vm248_vm1 = vcmp.gt.f32.partialorder %v152_v58, 0.0  ;;  %v1676_v60 = vsel %vm247_vm0, %v55_v51, -1e+30  ;;  %v58_v62 = vld [vmem:[#allocation2 + $0x98] sm:$0xff]  ;;  %v153_v63 = vld [vmem:[#allocation4 + $0x90] sm:$0xff]  ;;  %v59_v2 = vld [vmem:[#allocation2 + $0xa0] sm:$0xff] }
  0x37   :  { %v1678_v0 = vsel %vm248_vm1, %v56_v53, -1e+30  ;;  %v154_v1 = vld [vmem:[#allocation4 + $0x98] sm:$0xff]  ;;  %vm249_vm2 = vcmp.gt.f32.partialorder %v153_v63, 0.0  ;;  %v60_v3 = vld [vmem:[#allocation2 + $0xa8] sm:$0xff]  ;;  %v155_v5 = vld [vmem:[#allocation4 + $0xa0] sm:$0xff]  ;;  %442 = vmax.xlane.f32.xlu0 %v441_v55 }
  0x38   :  { %vm250_vm3 = vcmp.gt.f32.partialorder %v154_v1, 0.0  ;;  %v1680_v4 = vsel %vm249_vm2, %v57_v61, -1e+30  ;;  %v156_v7 = vld [vmem:[#allocation4 + $0xa8] sm:$0xff]  ;;  %v61_v8 = vld [vmem:[#allocation2 + $0xb0] sm:$0xff]  ;;  %v447_v9 = vmax.f32 %v1676_v60, %v1678_v0  ;;  %vm251_vm4 = vcmp.gt.f32.partialorder %v155_v5, 0.0 }
  0x39   :  { %v1684_v11 = vsel %vm250_vm3, %v58_v62, -1e+30  ;;  %vm252_vm5 = vcmp.gt.f32.partialorder %v156_v7, 0.0  ;;  %v62_v12 = vld [vmem:[#allocation2 + $0xb8] sm:$0xff]  ;;  %v157_v13 = vld [vmem:[#allocation4 + $0xb0] sm:$0xff]  ;;  %445 = vmax.xlane.f32.xlu1 %v444_v59  ;;  %v63_v23 = vld [vmem:[#allocation2 + $0xc0] sm:$0xff] }
  0x3a   :  { %v450_v16 = vmax.f32 %v1680_v4, %v1684_v11  ;;  %v1688_v17 = vsel %vm251_vm4, %v59_v2, -1e+30  ;;  %v1690_v19 = vsel %vm252_vm5, %v60_v3, -1e+30  ;;  %v158_v20 = vld [vmem:[#allocation4 + $0xb8] sm:$0xff]  ;;  %vm253_vm6 = vcmp.gt.f32.partialorder %v157_v13, 0.0 }
  0x3b   :  { %vm254_vm7 = vcmp.gt.f32.partialorder %v158_v20, 0.0  ;;  %v1692_v21 = vsel %vm253_vm6, %v61_v8, -1e+30  ;;  %v64_v24 = vld [vmem:[#allocation2 + $0xc8] sm:$0xff]  ;;  %v159_v25 = vld [vmem:[#allocation4 + $0xc0] sm:$0xff]  ;;  %v65_v29 = vld [vmem:[#allocation2 + $0xd0] sm:$0xff]  ;;  %448 = vmax.xlane.f32.xlu0 %v447_v9  ;;  %v453_v32 = vmax.f32 %v1688_v17, %v1690_v19 }
  0x3c   :  { %v1694_v26 = vsel %vm254_vm7, %v62_v12, -1e+30  ;;  %v160_v28 = vld [vmem:[#allocation4 + $0xc8] sm:$0xff]  ;;  %vm255_vm8 = vcmp.gt.f32.partialorder %v159_v25, 0.0  ;;  %v66_v30 = vld [vmem:[#allocation2 + $0xd8] sm:$0xff]  ;;  %v161_v34 = vld [vmem:[#allocation4 + $0xd0] sm:$0xff] }
  0x3d   :  { %vm256_vm9 = vcmp.gt.f32.partialorder %v160_v28, 0.0  ;;  %v1698_v33 = vsel %vm255_vm8, %v63_v23, -1e+30  ;;  %v162_v37 = vld [vmem:[#allocation4 + $0xd8] sm:$0xff]  ;;  %v67_v38 = vld [vmem:[#allocation2 + $0xe0] sm:$0xff]  ;;  %451 = vmax.xlane.f32.xlu1 %v450_v16  ;;  %v456_v40 = vmax.f32 %v1692_v21, %v1694_v26  ;;  %vm257_vm10 = vcmp.gt.f32.partialorder %v161_v34, 0.0 }
  0x3e   :  { %v1702_v41 = vsel %vm256_vm9, %v64_v24, -1e+30  ;;  %vm258_vm11 = vcmp.gt.f32.partialorder %v162_v37, 0.0  ;;  %v68_v42 = vld [vmem:[#allocation2 + $0xe8] sm:$0xff]  ;;  %v163_v44 = vld [vmem:[#allocation4 + $0xe0] sm:$0xff]  ;;  %v69_v50 = vld [vmem:[#allocation2 + $0xf0] sm:$0xff] }
  0x3f   :  { %v1704_v45 = vsel %vm257_vm10, %v65_v29, -1e+30  ;;  %v1706_v46 = vsel %vm258_vm11, %v66_v30, -1e+30  ;;  %v164_v47 = vld [vmem:[#allocation4 + $0xe8] sm:$0xff]  ;;  %vm259_vm12 = vcmp.gt.f32.partialorder %v163_v44, 0.0  ;;  %454 = vmax.xlane.f32.xlu0 %v453_v32  ;;  %v459_v54 = vmax.f32 %v1698_v33, %v1702_v41 }
  0x40   :  { %vm260_vm13 = vcmp.gt.f32.partialorder %v164_v47, 0.0  ;;  %v1708_v49 = vsel %vm259_vm12, %v67_v38, -1e+30  ;;  %v70_v51 = vld [vmem:[#allocation2 + $0xf8] sm:$0xff]  ;;  %v165_v53 = vld [vmem:[#allocation4 + $0xf0] sm:$0xff]  ;;  %v71_v59 = vld [vmem:[#allocation2 + $0x100] sm:$0xff]  ;;  %v462_v61 = vmax.f32 %v1704_v45, %v1706_v46 }
  0x41   :  { %v1712_v55 = vsel %vm260_vm13, %v68_v42, -1e+30  ;;  %v166_v58 = vld [vmem:[#allocation4 + $0xf8] sm:$0xff]  ;;  %vm261_vm14 = vcmp.gt.f32.partialorder %v165_v53, 0.0  ;;  %457 = vmax.xlane.f32.xlu1 %v456_v40  ;;  %v72_v63 = vld [vmem:[#allocation2 + $0x108] sm:$0xff]  ;;  %v167_v1 = vld [vmem:[#allocation4 + $0x100] sm:$0xff] }
  0x42   :  { %vm262_vm15 = vcmp.gt.f32.partialorder %v166_v58, 0.0  ;;  %v1716_v62 = vsel %vm261_vm14, %v69_v50, -1e+30  ;;  %v168_v2 = vld [vmem:[#allocation4 + $0x108] sm:$0xff]  ;;  %vm263_vm0 = vcmp.gt.f32.partialorder %v167_v1, 0.0  ;;  %v73_v5 = vld [vmem:[#allocation2 + $0x110] sm:$0xff]  ;;  %v465_v12 = vmax.f32 %v1708_v49, %v1712_v55 }
  0x43   :  { %v1718_v3 = vsel %vm262_vm15, %v70_v51, -1e+30  ;;  %vm264_vm1 = vcmp.gt.f32.partialorder %v168_v2, 0.0  ;;  %v169_v7 = vld [vmem:[#allocation4 + $0x110] sm:$0xff]  ;;  %v74_v8 = vld [vmem:[#allocation2 + $0x118] sm:$0xff]  ;;  %460 = vmax.xlane.f32.xlu0 %v459_v54  ;;  %v171_v20 = vld [vmem:[#allocation4 + $0x120] sm:$0xff] }
  0x44   :  { %v170_v9 = vld [vmem:[#allocation4 + $0x118] sm:$0xff]  ;;  %vm265_vm2 = vcmp.gt.f32.partialorder %v169_v7, 0.0  ;;  %v1722_v13 = vsel %vm263_vm0, %v71_v59, -1e+30  ;;  %v1724_v16 = vsel %vm264_vm1, %v72_v63, -1e+30  ;;  %v468_v23 = vmax.f32 %v1716_v62, %v1718_v3 }
  0x45   :  { %vm266_vm3 = vcmp.gt.f32.partialorder %v170_v9, 0.0  ;;  %463 = vmax.xlane.f32.xlu1 %v462_v61  ;;  %v1728_v24 = vsel %vm265_vm2, %v73_v5, -1e+30  ;;  %v75_v25 = vld [vmem:[#allocation2 + $0x120] sm:$0xff]  ;;  %v76_v28 = vld [vmem:[#allocation2 + $0x128] sm:$0xff]  ;;  %vm267_vm4 = vcmp.gt.f32.partialorder %v171_v20, 0.0  ;;  %v471_v42 = vmax.f32 %v1722_v13, %v1724_v16 }
  0x46   :  { %v172_v29 = vld [vmem:[#allocation4 + $0x128] sm:$0xff]  ;;  %v1730_v30 = vsel %vm266_vm3, %v74_v8, -1e+30  ;;  %v77_v32 = vld [vmem:[#allocation2 + $0x130] sm:$0xff]  ;;  %v174_v37 = vld [vmem:[#allocation4 + $0x138] sm:$0xff] }
  0x47   :  { %vm268_vm5 = vcmp.gt.f32.partialorder %v172_v29, 0.0  ;;  %v173_v34 = vld [vmem:[#allocation4 + $0x130] sm:$0xff]  ;;  %v78_v38 = vld [vmem:[#allocation2 + $0x138] sm:$0xff]  ;;  %vm270_vm7 = vcmp.gt.f32.partialorder %v174_v37, 0.0  ;;  %v175_v40 = vld [vmem:[#allocation4 + $0x140] sm:$0xff]  ;;  %466 = vmax.xlane.f32.xlu0 %v465_v12  ;;  %v474_v53 = vmax.f32 %v1728_v24, %v1730_v30 }
  0x48   :  { %vm269_vm6 = vcmp.gt.f32.partialorder %v173_v34, 0.0  ;;  %v1734_v44 = vsel %vm267_vm4, %v75_v25, -1e+30  ;;  %v1736_v47 = vsel %vm268_vm5, %v76_v28, -1e+30  ;;  %v79_v50 = vld [vmem:[#allocation2 + $0x140] sm:$0xff] }
  0x49   :  { %v176_v51 = vld [vmem:[#allocation4 + $0x148] sm:$0xff]  ;;  %469 = vmax.xlane.f32.xlu1 %v468_v23  ;;  %v1740_v54 = vsel %vm269_vm6, %v77_v32, -1e+30  ;;  %vm271_vm8 = vcmp.gt.f32.partialorder %v175_v40, 0.0  ;;  %v177_v59 = vld [vmem:[#allocation4 + $0x150] sm:$0xff]  ;;  %v178_v1 = vld [vmem:[#allocation4 + $0x158] sm:$0xff]  ;;  %v477_v8 = vmax.f32 %v1734_v44, %v1736_v47 }
  0x4a   :  { %v80_v58 = vld [vmem:[#allocation2 + $0x148] sm:$0xff]  ;;  %vm272_vm9 = vcmp.gt.f32.partialorder %v176_v51, 0.0  ;;  %v1742_v61 = vsel %vm270_vm7, %v78_v38, -1e+30  ;;  %v81_v63 = vld [vmem:[#allocation2 + $0x150] sm:$0xff]  ;;  %vm273_vm10 = vcmp.gt.f32.partialorder %v177_v59, 0.0 }
  0x4b   :  { %v82_v2 = vld [vmem:[#allocation2 + $0x158] sm:$0xff]  ;;  %vm274_vm11 = vcmp.gt.f32.partialorder %v178_v1, 0.0  ;;  %v179_v5 = vld [vmem:[#allocation4 + $0x160] sm:$0xff]  ;;  %v180_v7 = vld [vmem:[#allocation4 + $0x168] sm:$0xff]  ;;  %472 = vmax.xlane.f32.xlu0 %v471_v42  ;;  %v1746_v9 = vsel %vm271_vm8, %v79_v50, -1e+30  ;;  %v480_v25 = vmax.f32 %v1740_v54, %v1742_v61 }
  0x4c   :  { %v1748_v12 = vsel %vm272_vm9, %v80_v58, -1e+30  ;;  %v83_v20 = vld [vmem:[#allocation2 + $0x160] sm:$0xff]  ;;  %v181_v23 = vld [vmem:[#allocation4 + $0x170] sm:$0xff]  ;;  %v1752_v28 = vsel %vm273_vm10, %v81_v63, -1e+30 }
  0x4d   :  { %475 = vmax.xlane.f32.xlu1 %v474_v53  ;;  %2777 = vst [vmem:[#allocation8_spill] sm:$0xff] %v1752_v28  ;;  %v84_v29 = vld [vmem:[#allocation2 + $0x168] sm:$0xff]  ;;  %vm275_vm12 = vcmp.gt.f32.partialorder %v179_v5, 0.0  ;;  %vm276_vm13 = vcmp.gt.f32.partialorder %v180_v7, 0.0  ;;  %v182_v32 = vld [vmem:[#allocation4 + $0x178] sm:$0xff]  ;;  %v85_v37 = vld [vmem:[#allocation2 + $0x170] sm:$0xff]  ;;  %v483_v50 = vmax.f32 %v1746_v9, %v1748_v12 }
  0x4e   :  { %v1755_v34 = vsel %vm274_vm11, %v82_v2, -1e+30  ;;  %vm277_vm14 = vcmp.gt.f32.partialorder %v181_v23, 0.0  ;;  %v183_v38 = vld [vmem:[#allocation4 + $0x180] sm:$0xff]  ;;  %v86_v40 = vld [vmem:[#allocation2 + $0x178] sm:$0xff]  ;;  %vm278_vm15 = vcmp.gt.f32.partialorder %v182_v32, 0.0 }
  0x4f   :  { %2778 = vst [vmem:[#allocation9_spill] sm:$0xff] %v1755_v34  ;;  %v184_v42 = vld [vmem:[#allocation4 + $0x188] sm:$0xff]  ;;  %478 = vmax.xlane.f32.xlu0 %v477_v8  ;;  %v1759_v51 = vsel %vm275_vm12, %v83_v20, -1e+30  ;;  %v1761_v53 = vsel %vm276_vm13, %v84_v29, -1e+30  ;;  %v486_v63 = vmax.f32 %v1752_v28, %v1755_v34 }
  0x50   :  { %2779 = vst [vmem:[#allocation10_spill] sm:$0xff] %v1759_v51  ;;  %2780 = vst [vmem:[#allocation11_spill] sm:$0xff] %v1761_v53  ;;  %v185_v58 = vld [vmem:[#allocation4 + $0x190] sm:$0xff]  ;;  %v186_v59 = vld [vmem:[#allocation4 + $0x198] sm:$0xff]  ;;  %v1765_v1 = vsel %vm277_vm14, %v85_v37, -1e+30 }
  0x51   :  { %481 = vmax.xlane.f32.xlu1 %v480_v25  ;;  %2781 = vst [vmem:[#allocation12_spill] sm:$0xff] %v1765_v1  ;;  %v87_v2 = vld [vmem:[#allocation2 + $0x180] sm:$0xff]  ;;  %v88_v5 = vld [vmem:[#allocation2 + $0x188] sm:$0xff]  ;;  %vm279_vm0 = vcmp.gt.f32.partialorder %v183_v38, 0.0  ;;  %vm280_vm1 = vcmp.gt.f32.partialorder %v184_v42, 0.0  ;;  %v89_v8 = vld [vmem:[#allocation2 + $0x190] sm:$0xff]  ;;  %v489_v25 = vmax.f32 %v1759_v51, %v1761_v53 }
  0x52   :  { %v1767_v7 = vsel %vm278_vm15, %v86_v40, -1e+30  ;;  %vm281_vm2 = vcmp.gt.f32.partialorder %v185_v58, 0.0  ;;  %v187_v20 = vld [vmem:[#allocation4 + $0x1a0] sm:$0xff]  ;;  %v188_v23 = vld [vmem:[#allocation4 + $0x1a8] sm:$0xff]  ;;  %v90_v29 = vld [vmem:[#allocation2 + $0x198] sm:$0xff] }
  0x53   :  { %2782 = vst [vmem:[#allocation13_spill] sm:$0xff] %v1767_v7  ;;  %vm282_vm3 = vcmp.gt.f32.partialorder %v186_v59, 0.0  ;;  %v189_v32 = vld [vmem:[#allocation4 + $0x1b0] sm:$0xff]  ;;  %484 = vmax.xlane.f32.xlu0 %v483_v50  ;;  %v1771_v34 = vsel %vm279_vm0, %v87_v2, -1e+30  ;;  %v190_v28 = vld [vmem:[#allocation4 + $0x1b8] sm:$0xff]  ;;  %v492_v38 = vmax.f32 %v1765_v1, %v1767_v7 }
  0x54   :  { %2783 = vst [vmem:[#allocation14_spill] sm:$0xff] %v1771_v34  ;;  %v1773_v37 = vsel %vm280_vm1, %v88_v5, -1e+30  ;;  %v1777_v40 = vsel %vm281_vm2, %v89_v8, -1e+30  ;;  %v91_v42 = vld [vmem:[#allocation2 + $0x1a0] sm:$0xff] }
  0x55   :  { %2784 = vst [vmem:[#allocation15_spill] sm:$0xff] %v1773_v37  ;;  %487 = vmax.xlane.f32.xlu1 %v486_v63  ;;  %2785 = vst [vmem:[#allocation16_spill] sm:$0xff] %v1777_v40  ;;  %v92_v58 = vld [vmem:[#allocation2 + $0x1a8] sm:$0xff]  ;;  %vm283_vm4 = vcmp.gt.f32.partialorder %v187_v20, 0.0  ;;  %vm284_vm5 = vcmp.gt.f32.partialorder %v188_v23, 0.0  ;;  %v93_v50 = vld [vmem:[#allocation2 + $0x1b0] sm:$0xff]  ;;  %v495_v63 = vmax.f32 %v1771_v34, %v1773_v37 }
  0x56   :  { %v1779_v59 = vsel %vm282_vm3, %v90_v29, -1e+30  ;;  %vm285_vm6 = vcmp.gt.f32.partialorder %v189_v32, 0.0  ;;  %v191_v53 = vld [vmem:[#allocation4 + $0x1c0] sm:$0xff]  ;;  %v192_v2 = vld [vmem:[#allocation4 + $0x1c8] sm:$0xff]  ;;  %v94_v51 = vld [vmem:[#allocation2 + $0x1b8] sm:$0xff] }
  0x57   :  { %2786 = vst [vmem:[#allocation17_spill] sm:$0xff] %v1779_v59  ;;  %vm286_vm7 = vcmp.gt.f32.partialorder %v190_v28, 0.0  ;;  %v193_v5 = vld [vmem:[#allocation4 + $0x1d0] sm:$0xff]  ;;  %490 = vmax.xlane.f32.xlu0 %v489_v25  ;;  %v1783_v7 = vsel %vm283_vm4, %v91_v42, -1e+30  ;;  %v194_v1 = vld [vmem:[#allocation4 + $0x1d8] sm:$0xff]  ;;  %v498_v20 = vmax.f32 %v1777_v40, %v1779_v59 }
  0x58   :  { %2787 = vst [vmem:[#allocation18_spill] sm:$0xff] %v1783_v7  ;;  %v1785_v8 = vsel %vm284_vm5, %v92_v58, -1e+30  ;;  %v1789_v23 = vsel %vm285_vm6, %v93_v50, -1e+30  ;;  %v95_v29 = vld [vmem:[#allocation2 + $0x1c0] sm:$0xff] }
  0x59   :  { %2788 = vst [vmem:[#allocation19_spill] sm:$0xff] %v1785_v8  ;;  %493 = vmax.xlane.f32.xlu1 %v492_v38  ;;  %2789 = vst [vmem:[#allocation20_spill] sm:$0xff] %v1789_v23  ;;  %v96_v32 = vld [vmem:[#allocation2 + $0x1c8] sm:$0xff]  ;;  %vm287_vm8 = vcmp.gt.f32.partialorder %v191_v53, 0.0  ;;  %vm288_vm9 = vcmp.gt.f32.partialorder %v192_v2, 0.0  ;;  %v97_v25 = vld [vmem:[#allocation2 + $0x1d0] sm:$0xff]  ;;  %v501_v38 = vmax.f32 %v1783_v7, %v1785_v8 }
  0x5a   :  { %v1791_v28 = vsel %vm286_vm7, %v94_v51, -1e+30  ;;  %vm289_vm10 = vcmp.gt.f32.partialorder %v193_v5, 0.0  ;;  %v195_v37 = vld [vmem:[#allocation4 + $0x1e0] sm:$0xff]  ;;  %v196_v42 = vld [vmem:[#allocation4 + $0x1e8] sm:$0xff]  ;;  %v98_v34 = vld [vmem:[#allocation2 + $0x1d8] sm:$0xff] }
  0x5b   :  { %2790 = vst [vmem:[#allocation21_spill] sm:$0xff] %v1791_v28  ;;  %vm290_vm11 = vcmp.gt.f32.partialorder %v194_v1, 0.0  ;;  %v197_v58 = vld [vmem:[#allocation4 + $0x1f0] sm:$0xff]  ;;  %496 = vmax.xlane.f32.xlu0 %v495_v63  ;;  %v1795_v59 = vsel %vm287_vm8, %v95_v29, -1e+30  ;;  %v198_v40 = vld [vmem:[#allocation4 + $0x1f8] sm:$0xff]  ;;  %v504_v51 = vmax.f32 %v1789_v23, %v1791_v28 }
  0x5c   :  { %2791 = vst [vmem:[#allocation22_spill] sm:$0xff] %v1795_v59  ;;  %v1797_v50 = vsel %vm288_vm9, %v96_v32, -1e+30  ;;  %v1801_v53 = vsel %vm289_vm10, %v97_v25, -1e+30  ;;  %v99_v2 = vld [vmem:[#allocation2 + $0x1e0] sm:$0xff] }
  0x5d   :  { %2792 = vst [vmem:[#allocation23_spill] sm:$0xff] %v1797_v50  ;;  %499 = vmax.xlane.f32.xlu1 %v498_v20  ;;  %2793 = vst [vmem:[#allocation24_spill] sm:$0xff] %v1801_v53  ;;  %v100_v5 = vld [vmem:[#allocation2 + $0x1e8] sm:$0xff]  ;;  %vm291_vm12 = vcmp.gt.f32.partialorder %v195_v37, 0.0  ;;  %vm292_vm13 = vcmp.gt.f32.partialorder %v196_v42, 0.0  ;;  %v101_v63 = vld [vmem:[#allocation2 + $0x1f0] sm:$0xff]  ;;  %v507_v20 = vmax.f32 %v1795_v59, %v1797_v50 }
  0x5e   :  { %v1803_v1 = vsel %vm290_vm11, %v98_v34, -1e+30  ;;  %vm293_vm14 = vcmp.gt.f32.partialorder %v197_v58, 0.0  ;;  %v199_v8 = vld [vmem:[#allocation4 + $0x200] sm:$0xff]  ;;  %v200_v29 = vld [vmem:[#allocation4 + $0x208] sm:$0xff]  ;;  %v102_v7 = vld [vmem:[#allocation2 + $0x1f8] sm:$0xff] }
  0x5f   :  { %2794 = vst [vmem:[#allocation25_spill] sm:$0xff] %v1803_v1  ;;  %vm294_vm15 = vcmp.gt.f32.partialorder %v198_v40, 0.0  ;;  %v201_v32 = vld [vmem:[#allocation4 + $0x210] sm:$0xff]  ;;  %502 = vmax.xlane.f32.xlu0 %v501_v38  ;;  %v1807_v28 = vsel %vm291_vm12, %v99_v2, -1e+30  ;;  %v202_v23 = vld [vmem:[#allocation4 + $0x218] sm:$0xff]  ;;  %v510_v34 = vmax.f32 %v1801_v53, %v1803_v1 }
  0x60   :  { %2795 = vst [vmem:[#allocation26_spill] sm:$0xff] %v1807_v28  ;;  %v1809_v25 = vsel %vm292_vm13, %v100_v5, -1e+30  ;;  %v1813_v37 = vsel %vm293_vm14, %v101_v63, -1e+30  ;;  %v103_v42 = vld [vmem:[#allocation2 + $0x200] sm:$0xff] }
  0x61   :  { %2796 = vst [vmem:[#allocation27_spill] sm:$0xff] %v1809_v25  ;;  %505 = vmax.xlane.f32.xlu1 %v504_v51  ;;  %2797 = vst [vmem:[#allocation28_spill] sm:$0xff] %v1813_v37  ;;  %v104_v58 = vld [vmem:[#allocation2 + $0x208] sm:$0xff]  ;;  %vm295_vm0 = vcmp.gt.f32.partialorder %v199_v8, 0.0  ;;  %vm296_vm1 = vcmp.gt.f32.partialorder %v200_v29, 0.0  ;;  %v105_v38 = vld [vmem:[#allocation2 + $0x210] sm:$0xff]  ;;  %v513_v51 = vmax.f32 %v1807_v28, %v1809_v25 }
  0x62   :  { %v1815_v40 = vsel %vm294_vm15, %v102_v7, -1e+30  ;;  %vm297_vm2 = vcmp.gt.f32.partialorder %v201_v32, 0.0  ;;  %v203_v50 = vld [vmem:[#allocation4 + $0x220] sm:$0xff]  ;;  %v204_v2 = vld [vmem:[#allocation4 + $0x228] sm:$0xff]  ;;  %v106_v59 = vld [vmem:[#allocation2 + $0x218] sm:$0xff] }
  0x63   :  { %2798 = vst [vmem:[#allocation29_spill] sm:$0xff] %v1815_v40  ;;  %vm298_vm3 = vcmp.gt.f32.partialorder %v202_v23, 0.0  ;;  %v205_v5 = vld [vmem:[#allocation4 + $0x230] sm:$0xff]  ;;  %508 = vmax.xlane.f32.xlu0 %v507_v20  ;;  %v1819_v1 = vsel %vm295_vm0, %v103_v42, -1e+30  ;;  %v206_v53 = vld [vmem:[#allocation4 + $0x238] sm:$0xff]  ;;  %v516_v7 = vmax.f32 %v1813_v37, %v1815_v40 }
  0x64   :  { %2799 = vst [vmem:[#allocation30_spill] sm:$0xff] %v1819_v1  ;;  %v1821_v63 = vsel %vm296_vm1, %v104_v58, -1e+30  ;;  %v1825_v8 = vsel %vm297_vm2, %v105_v38, -1e+30  ;;  %v107_v29 = vld [vmem:[#allocation2 + $0x220] sm:$0xff] }
  0x65   :  { %2800 = vst [vmem:[#allocation31_spill] sm:$0xff] %v1821_v63  ;;  %511 = vmax.xlane.f32.xlu1 %v510_v34  ;;  %2801 = vst [vmem:[#allocation32_spill] sm:$0xff] %v1825_v8  ;;  %v108_v32 = vld [vmem:[#allocation2 + $0x228] sm:$0xff]  ;;  %vm299_vm4 = vcmp.gt.f32.partialorder %v203_v50, 0.0  ;;  %vm300_vm5 = vcmp.gt.f32.partialorder %v204_v2, 0.0  ;;  %v109_v20 = vld [vmem:[#allocation2 + $0x230] sm:$0xff]  ;;  %v519_v34 = vmax.f32 %v1819_v1, %v1821_v63 }
  0x66   :  { %v1827_v23 = vsel %vm298_vm3, %v106_v59, -1e+30  ;;  %vm301_vm6 = vcmp.gt.f32.partialorder %v205_v5, 0.0  ;;  %v207_v25 = vld [vmem:[#allocation4 + $0x240] sm:$0xff]  ;;  %v208_v42 = vld [vmem:[#allocation4 + $0x248] sm:$0xff]  ;;  %v110_v28 = vld [vmem:[#allocation2 + $0x238] sm:$0xff] }
  0x67   :  { %2802 = vst [vmem:[#allocation33_spill] sm:$0xff] %v1827_v23  ;;  %vm302_vm7 = vcmp.gt.f32.partialorder %v206_v53, 0.0  ;;  %v209_v58 = vld [vmem:[#allocation4 + $0x250] sm:$0xff]  ;;  %514 = vmax.xlane.f32.xlu0 %v513_v51  ;;  %v1831_v40 = vsel %vm299_vm4, %v107_v29, -1e+30  ;;  %v210_v37 = vld [vmem:[#allocation4 + $0x258] sm:$0xff]  ;;  %v522_v59 = vmax.f32 %v1825_v8, %v1827_v23 }
  0x68   :  { %2803 = vst [vmem:[#allocation34_spill] sm:$0xff] %v1831_v40  ;;  %v1833_v38 = vsel %vm300_vm5, %v108_v32, -1e+30  ;;  %v1837_v50 = vsel %vm301_vm6, %v109_v20, -1e+30  ;;  %v111_v2 = vld [vmem:[#allocation2 + $0x240] sm:$0xff] }
  0x69   :  { %2804 = vst [vmem:[#allocation35_spill] sm:$0xff] %v1833_v38  ;;  %517 = vmax.xlane.f32.xlu1 %v516_v7  ;;  %2805 = vst [vmem:[#allocation36_spill] sm:$0xff] %v1837_v50  ;;  %v112_v5 = vld [vmem:[#allocation2 + $0x248] sm:$0xff]  ;;  %vm303_vm8 = vcmp.gt.f32.partialorder %v207_v25, 0.0  ;;  %vm304_vm9 = vcmp.gt.f32.partialorder %v208_v42, 0.0  ;;  %v113_v51 = vld [vmem:[#allocation2 + $0x250] sm:$0xff]  ;;  %v525_v7 = vmax.f32 %v1831_v40, %v1833_v38 }
  0x6a   :  { %v1839_v53 = vsel %vm302_vm7, %v110_v28, -1e+30  ;;  %vm305_vm10 = vcmp.gt.f32.partialorder %v209_v58, 0.0  ;;  %v211_v63 = vld [vmem:[#allocation4 + $0x260] sm:$0xff]  ;;  %v212_v29 = vld [vmem:[#allocation4 + $0x268] sm:$0xff]  ;;  %v114_v1 = vld [vmem:[#allocation2 + $0x258] sm:$0xff] }
  0x6b   :  { %2806 = vst [vmem:[#allocation37_spill] sm:$0xff] %v1839_v53  ;;  %vm306_vm11 = vcmp.gt.f32.partialorder %v210_v37, 0.0  ;;  %v213_v32 = vld [vmem:[#allocation4 + $0x270] sm:$0xff]  ;;  %520 = vmax.xlane.f32.xlu0 %v519_v34  ;;  %v1843_v23 = vsel %vm303_vm8, %v111_v2, -1e+30  ;;  %v214_v8 = vld [vmem:[#allocation4 + $0x278] sm:$0xff]  ;;  %v528_v28 = vmax.f32 %v1837_v50, %v1839_v53 }
  0x6c   :  { %2807 = vst [vmem:[#allocation38_spill] sm:$0xff] %v1843_v23  ;;  %v1845_v20 = vsel %vm304_vm9, %v112_v5, -1e+30  ;;  %v1849_v25 = vsel %vm305_vm10, %v113_v51, -1e+30  ;;  %v115_v42 = vld [vmem:[#allocation2 + $0x260] sm:$0xff] }
  0x6d   :  { %2808 = vst [vmem:[#allocation39_spill] sm:$0xff] %v1845_v20  ;;  %523 = vmax.xlane.f32.xlu1 %v522_v59  ;;  %2809 = vst [vmem:[#allocation40_spill] sm:$0xff] %v1849_v25  ;;  %v116_v58 = vld [vmem:[#allocation2 + $0x268] sm:$0xff]  ;;  %vm307_vm12 = vcmp.gt.f32.partialorder %v211_v63, 0.0  ;;  %vm308_vm13 = vcmp.gt.f32.partialorder %v212_v29, 0.0  ;;  %v117_v34 = vld [vmem:[#allocation2 + $0x270] sm:$0xff]  ;;  %v531_v59 = vmax.f32 %v1843_v23, %v1845_v20 }
  0x6e   :  { %v1851_v37 = vsel %vm306_vm11, %v114_v1, -1e+30  ;;  %vm309_vm14 = vcmp.gt.f32.partialorder %v213_v32, 0.0  ;;  %v215_v38 = vld [vmem:[#allocation4 + $0x280] sm:$0xff]  ;;  %v118_v2 = vld [vmem:[#allocation2 + $0x278] sm:$0xff]  ;;  %vm310_vm15 = vcmp.gt.f32.partialorder %v214_v8, 0.0 }
  0x6f   :  { %2810 = vst [vmem:[#allocation41_spill] sm:$0xff] %v1851_v37  ;;  %v216_v5 = vld [vmem:[#allocation4 + $0x288] sm:$0xff]  ;;  %v217_v40 = vld [vmem:[#allocation4 + $0x290] sm:$0xff]  ;;  %526 = vmax.xlane.f32.xlu0 %v525_v7  ;;  %v1855_v53 = vsel %vm307_vm12, %v115_v42, -1e+30  ;;  %v218_v50 = vld [vmem:[#allocation4 + $0x298] sm:$0xff]  ;;  %v534_v1 = vmax.f32 %v1849_v25, %v1851_v37 }
  0x70   :  { %2811 = vst [vmem:[#allocation42_spill] sm:$0xff] %v1855_v53  ;;  %v1857_v51 = vsel %vm308_vm13, %v116_v58, -1e+30  ;;  %v1861_v63 = vsel %vm309_vm14, %v117_v34, -1e+30  ;;  %v119_v29 = vld [vmem:[#allocation2 + $0x280] sm:$0xff] }
  0x71   :  { %2812 = vst [vmem:[#allocation43_spill] sm:$0xff] %v1857_v51  ;;  %529 = vmax.xlane.f32.xlu1 %v528_v28  ;;  %2813 = vst [vmem:[#allocation44_spill] sm:$0xff] %v1861_v63  ;;  %v120_v32 = vld [vmem:[#allocation2 + $0x288] sm:$0xff]  ;;  %vm311_vm0 = vcmp.gt.f32.partialorder %v215_v38, 0.0  ;;  %v1863_v8 = vsel %vm310_vm15, %v118_v2, -1e+30  ;;  %v537_v28 = vmax.f32 %v1855_v53, %v1857_v51 }
  0x72   :  { %2814 = vst [vmem:[#allocation45_spill] sm:$0xff] %v1863_v8  ;;  %vm312_vm1 = vcmp.gt.f32.partialorder %v216_v5, 0.0  ;;  %v121_v7 = vld [vmem:[#allocation2 + $0x290] sm:$0xff]  ;;  %vm313_vm2 = vcmp.gt.f32.partialorder %v217_v40, 0.0  ;;  %v219_v20 = vld [vmem:[#allocation4 + $0x2a0] sm:$0xff]  ;;  %v122_v42 = vld [vmem:[#allocation2 + $0x298] sm:$0xff]  ;;  %v540_v38 = vmax.f32 %v1861_v63, %v1863_v8 }
  0x73   :  { %vm314_vm3 = vcmp.gt.f32.partialorder %v218_v50, 0.0  ;;  %v220_v58 = vld [vmem:[#allocation4 + $0x2a8] sm:$0xff]  ;;  %v221_v23 = vld [vmem:[#allocation4 + $0x2b0] sm:$0xff]  ;;  %532 = vmax.xlane.f32.xlu0 %v531_v59  ;;  %v1867_v37 = vsel %vm311_vm0, %v119_v29, -1e+30  ;;  %v222_v34 = vld [vmem:[#allocation4 + $0x2b8] sm:$0xff] }
  0x74   :  { %2815 = vst [vmem:[#allocation46_spill] sm:$0xff] %v1867_v37  ;;  %v1871_v2 = vsel %vm312_vm1, %v120_v32, -1e+30  ;;  %v1873_v5 = vsel %vm313_vm2, %v121_v7, -1e+30  ;;  %v123_v40 = vld [vmem:[#allocation2 + $0x2a0] sm:$0xff] }
  0x75   :  { %535 = vmax.xlane.f32.xlu1 %v534_v1  ;;  %2816 = vst [vmem:[#allocation47_spill] sm:$0xff] %v1871_v2  ;;  %2817 = vst [vmem:[#allocation48_spill] sm:$0xff] %v1873_v5  ;;  %vm315_vm4 = vcmp.gt.f32.partialorder %v219_v20, 0.0  ;;  %v1875_v50 = vsel %vm314_vm3, %v122_v42, -1e+30  ;;  %v124_v25 = vld [vmem:[#allocation2 + $0x2a8] sm:$0xff]  ;;  %v543_v1 = vmax.f32 %v1867_v37, %v1871_v2 }
  0x76   :  { %2818 = vst [vmem:[#allocation49_spill] sm:$0xff] %v1875_v50  ;;  %vm316_vm5 = vcmp.gt.f32.partialorder %v220_v58, 0.0  ;;  %v125_v59 = vld [vmem:[#allocation2 + $0x2b0] sm:$0xff]  ;;  %vm317_vm6 = vcmp.gt.f32.partialorder %v221_v23, 0.0  ;;  %v126_v51 = vld [vmem:[#allocation2 + $0x2b8] sm:$0xff]  ;;  %vm318_vm7 = vcmp.gt.f32.partialorder %v222_v34, 0.0  ;;  %v546_v20 = vmax.f32 %v1873_v5, %v1875_v50 }
  0x77   :  { %v223_v29 = vld [vmem:[#allocation4 + $0x2c0] sm:$0xff]  ;;  %v224_v53 = vld [vmem:[#allocation4 + $0x2c8] sm:$0xff]  ;;  %538 = vmax.xlane.f32.xlu0 %v537_v28  ;;  %v1879_v32 = vsel %vm315_vm4, %v123_v40, -1e+30  ;;  %v225_v7 = vld [vmem:[#allocation4 + $0x2d0] sm:$0xff] }
  0x78   :  { %v226_v8 = vld [vmem:[#allocation4 + $0x2d8] sm:$0xff]  ;;  %v1883_v42 = vsel %vm316_vm5, %v124_v25, -1e+30  ;;  %v1885_v58 = vsel %vm317_vm6, %v125_v59, -1e+30  ;;  %v127_v23 = vld [vmem:[#allocation2 + $0x2c0] sm:$0xff] }
  0x79   :  { %541 = vmax.xlane.f32.xlu1 %v540_v38  ;;  %2819 = vst [vmem:[#allocation50_spill] sm:$0xff] %v1883_v42  ;;  %v1887_v34 = vsel %vm318_vm7, %v126_v51, -1e+30  ;;  %v128_v63 = vld [vmem:[#allocation2 + $0x2c8] sm:$0xff]  ;;  %vm319_vm8 = vcmp.gt.f32.partialorder %v223_v29, 0.0  ;;  %vm320_vm9 = vcmp.gt.f32.partialorder %v224_v53, 0.0  ;;  %v549_v38 = vmax.f32 %v1879_v32, %v1883_v42 }
  0x7a   :  { %v129_v28 = vld [vmem:[#allocation2 + $0x2d0] sm:$0xff]  ;;  %v130_v2 = vld [vmem:[#allocation2 + $0x2d8] sm:$0xff]  ;;  %vm321_vm10 = vcmp.gt.f32.partialorder %v225_v7, 0.0  ;;  %vm322_vm11 = vcmp.gt.f32.partialorder %v226_v8, 0.0  ;;  %v227_v40 = vld [vmem:[#allocation4 + $0x2e0] sm:$0xff]  ;;  %v552_v51 = vmax.f32 %v1885_v58, %v1887_v34 }
  0x7b   :  { %v228_v37 = vld [vmem:[#allocation4 + $0x2e8] sm:$0xff]  ;;  %544 = vmax.xlane.f32.xlu0 %v543_v1  ;;  %v229_v25 = vld [vmem:[#allocation4 + $0x2f0] sm:$0xff]  ;;  %v230_v50 = vld [vmem:[#allocation4 + $0x2f8] sm:$0xff]  ;;  %v1893_v59 = vsel %vm319_vm8, %v127_v23, -1e+30  ;;  %vm323_vm12 = vcmp.gt.f32.partialorder %v227_v40, 0.0 }
  0x7c   :  { %v1895_v29 = vsel %vm320_vm9, %v128_v63, -1e+30  ;;  %v131_v53 = vld [vmem:[#allocation2 + $0x2e0] sm:$0xff]  ;;  %v132_v5 = vld [vmem:[#allocation2 + $0x2e8] sm:$0xff]  ;;  %v1897_v7 = vsel %vm321_vm10, %v129_v28, -1e+30 }
  0x7d   :  { %547 = vmax.xlane.f32.xlu1 %v546_v20  ;;  %v1899_v8 = vsel %vm322_vm11, %v130_v2, -1e+30  ;;  %vm324_vm13 = vcmp.gt.f32.partialorder %v228_v37, 0.0  ;;  %v133_v1 = vld [vmem:[#allocation2 + $0x2f0] sm:$0xff]  ;;  %v134_v42 = vld [vmem:[#allocation2 + $0x2f8] sm:$0xff]  ;;  %vm325_vm14 = vcmp.gt.f32.partialorder %v229_v25, 0.0  ;;  %v555_v20 = vmax.f32 %v1893_v59, %v1895_v29 }
  0x7e   :  { %2820 = vst [vmem:[#allocation51_spill] sm:$0xff] %v1899_v8  ;;  %vm326_vm15 = vcmp.gt.f32.partialorder %v230_v50, 0.0  ;;  %v558_v63 = vmax.f32 %v1897_v7, %v1899_v8  ;;  %v1905_v23 = vsel %vm323_vm12, %v131_v53, -1e+30  ;;  %v1907_v28 = vsel %vm324_vm13, %v132_v5, -1e+30 }
  0x7f   :  { %550 = vmax.xlane.f32.xlu0 %v549_v38  ;;  %2821 = vst [vmem:[#allocation52_spill] sm:$0xff] %v1907_v28  ;;  %v1909_v2 = vsel %vm325_vm14, %v133_v1, -1e+30  ;;  %v1911_v40 = vsel %vm326_vm15, %v134_v42, -1e+30  ;;  %v561_v37 = vmax.f32 %v1905_v23, %v1907_v28 }
  0x80   :  { %2822 = vst [vmem:[#allocation53_spill] sm:$0xff] %v1911_v40  ;;  %v564_v50 = vmax.f32 %v1909_v2, %v1911_v40 }
  0x81   :  { %553 = vmax.xlane.f32.xlu1 %v552_v51 }
  0x83   :  { %556 = vmax.xlane.f32.xlu0 %v555_v20 }
  0x85   :  { %559 = vmax.xlane.f32.xlu1 %v558_v63 }
  0x87   :  { %562 = vmax.xlane.f32.xlu0 %v561_v37 }
  0x89   :  { %565 = vmax.xlane.f32.xlu1 %v564_v50 }
  0xb8   :  { %v425_v38 = vpop.xlane.xlu0 %424 }
  0xb9   :  { %v567_v25 = vsub.f32 %v1628_v6, %v425_v38  ;;  %v568_v5 = vsub.f32 %v1630_v10, %v425_v38 }
  0xba   :  { %v431_v51 = vpop.xlane.xlu1 %430 }
  0xbb   :  { %v571_v53 = vsub.f32 %v1634_v14, %v431_v51  ;;  %v572_v42 = vsub.f32 %v1636_v15, %v431_v51  ;;  %v663_v1 = vmul.f32 1.442695, %v567_v25  ;;  %v665_v20 = vmul.f32 1.442695, %v568_v5 }
  0xbc   :  { %v428_v63 = vpop.xlane.xlu0 %427 }
  0xbd   :  { %v671_v8 = vmul.f32 1.442695, %v571_v53  ;;  %v673_v28 = vmul.f32 1.442695, %v572_v42  ;;  %1249 = vpow2.f32 %v663_v1  ;;  %v569_v40 = vsub.f32 %v1640_v18, %v428_v63 }
  0xbe   :  { %v570_v37 = vsub.f32 %v1642_v22, %v428_v63  ;;  %v434_v50 = vpop.xlane.xlu1 %433  ;;  %1251 = vpow2.f32 %v665_v20 }
  0xbf   :  { %v573_v6 = vsub.f32 %v1646_v27, %v434_v50  ;;  %v574_v10 = vsub.f32 %v1648_v31, %v434_v50  ;;  %1253 = vpow2.f32 %v671_v8  ;;  %v667_v14 = vmul.f32 1.442695, %v569_v40 }
  0xc0   :  { %v669_v38 = vmul.f32 1.442695, %v570_v37  ;;  %1255 = vpow2.f32 %v673_v28  ;;  %v437_v5 = vpop.xlane.xlu0 %436 }
  0xc1   :  { %v675_v15 = vmul.f32 1.442695, %v573_v6  ;;  %v677_v25 = vmul.f32 1.442695, %v574_v10  ;;  %1257 = vpow2.f32 %v667_v14  ;;  %v575_v51 = vsub.f32 %v1652_v35, %v437_v5 }
  0xc2   :  { %v576_v18 = vsub.f32 %v1654_v36, %v437_v5  ;;  %v440_v53 = vpop.xlane.xlu1 %439  ;;  %1259 = vpow2.f32 %v669_v38 }
  0xc3   :  { %v577_v22 = vsub.f32 %v1658_v39, %v440_v53  ;;  %v578_v27 = vsub.f32 %v1660_v43, %v440_v53  ;;  %1261 = vpow2.f32 %v675_v15  ;;  %v679_v31 = vmul.f32 1.442695, %v575_v51 }
  0xc4   :  { %v681_v8 = vmul.f32 1.442695, %v576_v18  ;;  %1263 = vpow2.f32 %v677_v25  ;;  %v443_v42 = vpop.xlane.xlu0 %442 }
  0xc5   :  { %v683_v40 = vmul.f32 1.442695, %v577_v22  ;;  %v685_v28 = vmul.f32 1.442695, %v578_v27  ;;  %1265 = vpow2.f32 %v679_v31  ;;  %v579_v1 = vsub.f32 %v1664_v48, %v443_v42 }
  0xc6   :  { %v580_v35 = vsub.f32 %v1666_v52, %v443_v42  ;;  %v446_v20 = vpop.xlane.xlu1 %445  ;;  %1267 = vpow2.f32 %v681_v8 }
  0xc7   :  { %v581_v36 = vsub.f32 %v1670_v56, %v446_v20  ;;  %v582_v39 = vsub.f32 %v1672_v57, %v446_v20  ;;  %v1933_v63 = vpop.eup %1249  ;;  %1269 = vpow2.f32 %v683_v40  ;;  %v687_v43 = vmul.f32 1.442695, %v579_v1 }
  0xc8   :  { %v689_v37 = vmul.f32 1.442695, %v580_v35  ;;  %v1935_v50 = vpop.eup %1251  ;;  %1271 = vpow2.f32 %v685_v28  ;;  %v449_v14 = vpop.xlane.xlu0 %448 }
  0xc9   :  { %v691_v6 = vmul.f32 1.442695, %v581_v36  ;;  %v693_v10 = vmul.f32 1.442695, %v582_v39  ;;  %v1937_v48 = vpop.eup %1253  ;;  %1273 = vpow2.f32 %v687_v43  ;;  %v583_v52 = vsub.f32 %v1676_v60, %v449_v14 }
  0xca   :  { %v584_v56 = vsub.f32 %v1678_v0, %v449_v14  ;;  %v855_v57 = vadd.f32 %v1935_v50, %v1933_v63  ;;  %v452_v38 = vpop.xlane.xlu1 %451  ;;  %v1943_v15 = vpop.eup %1255  ;;  %1275 = vpow2.f32 %v689_v37 }
  0xcb   :  { %v585_v25 = vsub.f32 %v1680_v4, %v452_v38  ;;  %v586_v5 = vsub.f32 %v1684_v11, %v452_v38  ;;  %v1947_v51 = vpop.eup %1257  ;;  %1277 = vpow2.f32 %v691_v6  ;;  %v695_v18 = vmul.f32 1.442695, %v583_v52 }
  0xcc   :  { %v697_v53 = vmul.f32 1.442695, %v584_v56  ;;  %856 = vadd.xlane.f32.xlu0 %v855_v57  ;;  %v861_v60 = vadd.f32 %v1943_v15, %v1937_v48  ;;  %v1951_v0 = vpop.eup %1259  ;;  %1279 = vpow2.f32 %v693_v10  ;;  %v455_v31 = vpop.xlane.xlu0 %454 }
  0xcd   :  { %v699_v22 = vmul.f32 1.442695, %v585_v25  ;;  %v701_v27 = vmul.f32 1.442695, %v586_v5  ;;  %v1953_v8 = vpop.eup %1261  ;;  %1281 = vpow2.f32 %v695_v18  ;;  %v587_v4 = vsub.f32 %v1688_v17, %v455_v31 }
  0xce   :  { %v588_v11 = vsub.f32 %v1690_v19, %v455_v31  ;;  %v858_v40 = vadd.f32 %v1951_v0, %v1947_v51  ;;  %v458_v28 = vpop.xlane.xlu1 %457  ;;  %v1959_v42 = vpop.eup %1263  ;;  %1283 = vpow2.f32 %v697_v53 }
  0xcf   :  { %v589_v1 = vsub.f32 %v1692_v21, %v458_v28  ;;  %v590_v35 = vsub.f32 %v1694_v26, %v458_v28  ;;  %v1963_v20 = vpop.eup %1265  ;;  %1285 = vpow2.f32 %v699_v22  ;;  %v703_v36 = vmul.f32 1.442695, %v587_v4 }
  0xd0   :  { %v705_v39 = vmul.f32 1.442695, %v588_v11  ;;  %862 = vadd.xlane.f32.xlu0 %v861_v60  ;;  %859 = vadd.xlane.f32.xlu1 %v858_v40  ;;  %v864_v17 = vadd.f32 %v1959_v42, %v1953_v8  ;;  %v1967_v19 = vpop.eup %1267  ;;  %1287 = vpow2.f32 %v701_v27  ;;  %v461_v6 = vpop.xlane.xlu0 %460 }
  0xd1   :  { %v707_v43 = vmul.f32 1.442695, %v589_v1  ;;  %v709_v37 = vmul.f32 1.442695, %v590_v35  ;;  %v1969_v10 = vpop.eup %1269  ;;  %1289 = vpow2.f32 %v703_v36  ;;  %v591_v21 = vsub.f32 %v1698_v33, %v461_v6 }
  0xd2   :  { %v592_v26 = vsub.f32 %v1702_v41, %v461_v6  ;;  %v867_v14 = vadd.f32 %v1967_v19, %v1963_v20  ;;  %v464_v52 = vpop.xlane.xlu1 %463  ;;  %v1975_v56 = vpop.eup %1271  ;;  %1291 = vpow2.f32 %v705_v39 }
  0xd3   :  { %v593_v57 = vsub.f32 %v1704_v45, %v464_v52  ;;  %v594_v38 = vsub.f32 %v1706_v46, %v464_v52  ;;  %v1979_v25 = vpop.eup %1273  ;;  %1293 = vpow2.f32 %v707_v43  ;;  %v711_v5 = vmul.f32 1.442695, %v591_v21 }
  0xd4   :  { %v713_v18 = vmul.f32 1.442695, %v592_v26  ;;  %865 = vadd.xlane.f32.xlu1 %v864_v17  ;;  %868 = vadd.xlane.f32.xlu0 %v867_v14  ;;  %v870_v33 = vadd.f32 %v1975_v56, %v1969_v10  ;;  %v1983_v41 = vpop.eup %1275  ;;  %1295 = vpow2.f32 %v709_v37  ;;  %v467_v22 = vpop.xlane.xlu0 %466 }
  0xd5   :  { %v715_v53 = vmul.f32 1.442695, %v593_v57  ;;  %v717_v60 = vmul.f32 1.442695, %v594_v38  ;;  %v1985_v27 = vpop.eup %1277  ;;  %1297 = vpow2.f32 %v711_v5  ;;  %v595_v45 = vsub.f32 %v1708_v49, %v467_v22 }
  0xd6   :  { %v596_v46 = vsub.f32 %v1712_v55, %v467_v22  ;;  %v873_v31 = vadd.f32 %v1983_v41, %v1979_v25  ;;  %v470_v4 = vpop.xlane.xlu1 %469  ;;  %v1991_v11 = vpop.eup %1279  ;;  %1299 = vpow2.f32 %v713_v18 }
  0xd7   :  { %v597_v40 = vsub.f32 %v1716_v62, %v470_v4  ;;  %v598_v28 = vsub.f32 %v1718_v3, %v470_v4  ;;  %v1995_v1 = vpop.eup %1281  ;;  %1301 = vpow2.f32 %v715_v53  ;;  %v719_v35 = vmul.f32 1.442695, %v595_v45 }
  0xd8   :  { %v721_v36 = vmul.f32 1.442695, %v596_v46  ;;  %871 = vadd.xlane.f32.xlu1 %v870_v33  ;;  %874 = vadd.xlane.f32.xlu0 %v873_v31  ;;  %v876_v49 = vadd.f32 %v1991_v11, %v1985_v27  ;;  %v1999_v55 = vpop.eup %1283  ;;  %1303 = vpow2.f32 %v717_v60  ;;  %v473_v43 = vpop.xlane.xlu0 %472 }
  0xd9   :  { %v723_v39 = vmul.f32 1.442695, %v597_v40  ;;  %v725_v17 = vmul.f32 1.442695, %v598_v28  ;;  %v2001_v37 = vpop.eup %1285  ;;  %1305 = vpow2.f32 %v719_v35  ;;  %v599_v62 = vsub.f32 %v1722_v13, %v473_v43 }
  0xda   :  { %v600_v3 = vsub.f32 %v1724_v16, %v473_v43  ;;  %v879_v6 = vadd.f32 %v1999_v55, %v1995_v1  ;;  %v476_v21 = vpop.xlane.xlu1 %475  ;;  %v2007_v26 = vpop.eup %1287  ;;  %1307 = vpow2.f32 %v721_v36 }
  0xdb   :  { %v601_v14 = vsub.f32 %v1728_v24, %v476_v21  ;;  %v602_v52 = vsub.f32 %v1730_v30, %v476_v21  ;;  %v2011_v57 = vpop.eup %1289  ;;  %1309 = vpow2.f32 %v723_v39  ;;  %v727_v38 = vmul.f32 1.442695, %v599_v62 }
  0xdc   :  { %v729_v5 = vmul.f32 1.442695, %v600_v3  ;;  %877 = vadd.xlane.f32.xlu1 %v876_v49  ;;  %880 = vadd.xlane.f32.xlu0 %v879_v6  ;;  %v882_v13 = vadd.f32 %v2007_v26, %v2001_v37  ;;  %v2015_v16 = vpop.eup %1291  ;;  %1311 = vpow2.f32 %v725_v17  ;;  %v479_v53 = vpop.xlane.xlu0 %478  ;;  %v2823_v6 = vld [vmem:[#allocation8_spill] sm:$0xff] }
  0xdd   :  { %v731_v18 = vmul.f32 1.442695, %v601_v14  ;;  %v733_v33 = vmul.f32 1.442695, %v602_v52  ;;  %v2017_v60 = vpop.eup %1293  ;;  %1313 = vpow2.f32 %v727_v38  ;;  %v603_v24 = vsub.f32 %v1734_v44, %v479_v53  ;;  %v2824_v14 = vld [vmem:[#allocation9_spill] sm:$0xff] }
  0xde   :  { %v604_v30 = vsub.f32 %v1736_v47, %v479_v53  ;;  %v885_v22 = vadd.f32 %v2015_v16, %v2011_v57  ;;  %v482_v45 = vpop.xlane.xlu1 %481  ;;  %v2023_v46 = vpop.eup %1295  ;;  %1315 = vpow2.f32 %v729_v5 }
  0xdf   :  { %v605_v31 = vsub.f32 %v1740_v54, %v482_v45  ;;  %v606_v4 = vsub.f32 %v1742_v61, %v482_v45  ;;  %v2027_v40 = vpop.eup %1297  ;;  %1317 = vpow2.f32 %v731_v18  ;;  %v735_v28 = vmul.f32 1.442695, %v603_v24  ;;  %v2826_v45 = vld [vmem:[#allocation11_spill] sm:$0xff] }
  0xe0   :  { %v737_v35 = vmul.f32 1.442695, %v604_v30  ;;  %883 = vadd.xlane.f32.xlu1 %v882_v13  ;;  %886 = vadd.xlane.f32.xlu0 %v885_v22  ;;  %v888_v44 = vadd.f32 %v2023_v46, %v2017_v60  ;;  %v2031_v47 = vpop.eup %1299  ;;  %1319 = vpow2.f32 %v733_v33  ;;  %v485_v39 = vpop.xlane.xlu0 %484  ;;  %v2825_v30 = vld [vmem:[#allocation10_spill] sm:$0xff] }
  0xe1   :  { %v739_v36 = vmul.f32 1.442695, %v605_v31  ;;  %v741_v49 = vmul.f32 1.442695, %v606_v4  ;;  %v2033_v17 = vpop.eup %1301  ;;  %1321 = vpow2.f32 %v735_v28  ;;  %v607_v54 = vsub.f32 %v1746_v9, %v485_v39 }
  0xe2   :  { %v608_v61 = vsub.f32 %v1748_v12, %v485_v39  ;;  %v891_v43 = vadd.f32 %v2031_v47, %v2027_v40  ;;  %v488_v62 = vpop.xlane.xlu1 %487  ;;  %v2039_v3 = vpop.eup %1303  ;;  %1323 = vpow2.f32 %v737_v35 }
  0xe3   :  { %v609_v21 = vsub.f32 %v2823_v6, %v488_v62  ;;  %v610_v52 = vsub.f32 %v2824_v14, %v488_v62  ;;  %v2043_v38 = vpop.eup %1305  ;;  %1325 = vpow2.f32 %v739_v36  ;;  %v743_v5 = vmul.f32 1.442695, %v607_v54 }
  0xe4   :  { %v745_v13 = vmul.f32 1.442695, %v608_v61  ;;  %889 = vadd.xlane.f32.xlu1 %v888_v44  ;;  %892 = vadd.xlane.f32.xlu0 %v891_v43  ;;  %v894_v9 = vadd.f32 %v2039_v3, %v2033_v17  ;;  %v2047_v12 = vpop.eup %1307  ;;  %1327 = vpow2.f32 %v741_v49  ;;  %v491_v53 = vpop.xlane.xlu0 %490  ;;  %v2827_v44 = vld [vmem:[#allocation12_spill] sm:$0xff]  ;;  %v2828_v49 = vld [vmem:[#allocation13_spill] sm:$0xff] }
  0xe5   :  { %v747_v18 = vmul.f32 1.442695, %v609_v21  ;;  %v749_v33 = vmul.f32 1.442695, %v610_v52  ;;  %v2049_v24 = vpop.eup %1309  ;;  %1329 = vpow2.f32 %v743_v5  ;;  %v611_v22 = vsub.f32 %v2825_v30, %v491_v53  ;;  %v2831_v30 = vld [vmem:[#allocation15_spill] sm:$0xff] }
  0xe6   :  { %v612_v31 = vsub.f32 %v2826_v45, %v491_v53  ;;  %v897_v4 = vadd.f32 %v2047_v12, %v2043_v38  ;;  %v494_v28 = vpop.xlane.xlu1 %493  ;;  %v2055_v35 = vpop.eup %1311  ;;  %1331 = vpow2.f32 %v745_v13  ;;  %v2830_v13 = vld [vmem:[#allocation14_spill] sm:$0xff] }
  0xe7   :  { %v613_v36 = vsub.f32 %v2827_v44, %v494_v28  ;;  %v614_v39 = vsub.f32 %v2828_v49, %v494_v28  ;;  %v2059_v54 = vpop.eup %1313  ;;  %1333 = vpow2.f32 %v747_v18  ;;  %v751_v61 = vmul.f32 1.442695, %v611_v22 }
  0xe8   :  { %v753_v43 = vmul.f32 1.442695, %v612_v31  ;;  %895 = vadd.xlane.f32.xlu1 %v894_v9  ;;  %898 = vadd.xlane.f32.xlu0 %v897_v4  ;;  %v900_v62 = vadd.f32 %v2055_v35, %v2049_v24  ;;  %v2063_v6 = vpop.eup %1315  ;;  %1335 = vpow2.f32 %v749_v33  ;;  %v497_v52 = vpop.xlane.xlu0 %496  ;;  %v2833_v31 = vld [vmem:[#allocation16_spill] sm:$0xff]  ;;  %v2834_v33 = vld [vmem:[#allocation17_spill] sm:$0xff] }
  0xe9   :  { %v755_v21 = vmul.f32 1.442695, %v613_v36  ;;  %v757_v14 = vmul.f32 1.442695, %v614_v39  ;;  %v2065_v5 = vpop.eup %1317  ;;  %1337 = vpow2.f32 %v751_v61  ;;  %v615_v53 = vsub.f32 %v2830_v13, %v497_v52 }
  0xea   :  { %2829 = vst [vmem:[#allocation8_spill] sm:$0xff] %v2065_v5  ;;  %v616_v18 = vsub.f32 %v2831_v30, %v497_v52  ;;  %v903_v9 = vadd.f32 %v2063_v6, %v2059_v54  ;;  %v500_v22 = vpop.xlane.xlu1 %499  ;;  %v2071_v45 = vpop.eup %1319  ;;  %1339 = vpow2.f32 %v753_v43 }
  0xeb   :  { %2832 = vst [vmem:[#allocation9_spill] sm:$0xff] %v2071_v45  ;;  %v617_v4 = vsub.f32 %v2833_v31, %v500_v22  ;;  %v618_v28 = vsub.f32 %v2834_v33, %v500_v22  ;;  %v2075_v44 = vpop.eup %1321  ;;  %1341 = vpow2.f32 %v755_v21  ;;  %v759_v36 = vmul.f32 1.442695, %v615_v53  ;;  %v2838_v22 = vld [vmem:[#allocation18_spill] sm:$0xff]  ;;  %v2839_v33 = vld [vmem:[#allocation19_spill] sm:$0xff] }
  0xec   :  { %2835 = vst [vmem:[#allocation10_spill] sm:$0xff] %v2075_v44  ;;  %v761_v49 = vmul.f32 1.442695, %v616_v18  ;;  %901 = vadd.xlane.f32.xlu1 %v900_v62  ;;  %904 = vadd.xlane.f32.xlu0 %v903_v9  ;;  %v906_v39 = vadd.f32 %v2071_v45, %v2065_v5  ;;  %v2079_v61 = vpop.eup %1323  ;;  %1343 = vpow2.f32 %v757_v14  ;;  %v503_v43 = vpop.xlane.xlu0 %502  ;;  %v2841_v9 = vld [vmem:[#allocation20_spill] sm:$0xff]  ;;  %v2842_v14 = vld [vmem:[#allocation21_spill] sm:$0xff] }
  0xed   :  { %2836 = vst [vmem:[#allocation11_spill] sm:$0xff] %v2079_v61  ;;  %v763_v52 = vmul.f32 1.442695, %v617_v4  ;;  %v765_v13 = vmul.f32 1.442695, %v618_v28  ;;  %v2081_v30 = vpop.eup %1325  ;;  %1345 = vpow2.f32 %v759_v36  ;;  %v619_v31 = vsub.f32 %v2838_v22, %v503_v43 }
  0xee   :  { %2837 = vst [vmem:[#allocation12_spill] sm:$0xff] %v2081_v30  ;;  %v620_v21 = vsub.f32 %v2839_v33, %v503_v43  ;;  %v909_v62 = vadd.f32 %v2079_v61, %v2075_v44  ;;  %v506_v53 = vpop.xlane.xlu1 %505  ;;  %v2087_v18 = vpop.eup %1327  ;;  %1347 = vpow2.f32 %v761_v49 }
  0xef   :  { %2840 = vst [vmem:[#allocation13_spill] sm:$0xff] %v2087_v18  ;;  %v621_v45 = vsub.f32 %v2841_v9, %v506_v53  ;;  %v622_v4 = vsub.f32 %v2842_v14, %v506_v53  ;;  %v2091_v28 = vpop.eup %1329  ;;  %1349 = vpow2.f32 %v763_v52  ;;  %v767_v5 = vmul.f32 1.442695, %v619_v31  ;;  %v2846_v53 = vld [vmem:[#allocation22_spill] sm:$0xff]  ;;  %v2847_v14 = vld [vmem:[#allocation23_spill] sm:$0xff] }
  0xf0   :  { %2843 = vst [vmem:[#allocation14_spill] sm:$0xff] %v2091_v28  ;;  %v769_v36 = vmul.f32 1.442695, %v620_v21  ;;  %907 = vadd.xlane.f32.xlu1 %v906_v39  ;;  %910 = vadd.xlane.f32.xlu0 %v909_v62  ;;  %v912_v43 = vadd.f32 %v2087_v18, %v2081_v30  ;;  %v2095_v22 = vpop.eup %1331  ;;  %1351 = vpow2.f32 %v765_v13  ;;  %v509_v49 = vpop.xlane.xlu0 %508  ;;  %v2849_v62 = vld [vmem:[#allocation24_spill] sm:$0xff]  ;;  %v2850_v13 = vld [vmem:[#allocation25_spill] sm:$0xff] }
  0xf1   :  { %2844 = vst [vmem:[#allocation15_spill] sm:$0xff] %v2095_v22  ;;  %v771_v33 = vmul.f32 1.442695, %v621_v45  ;;  %v773_v61 = vmul.f32 1.442695, %v622_v4  ;;  %v2097_v44 = vpop.eup %1333  ;;  %1353 = vpow2.f32 %v767_v5  ;;  %v623_v9 = vsub.f32 %v2846_v53, %v509_v49 }
  0xf2   :  { %2845 = vst [vmem:[#allocation16_spill] sm:$0xff] %v2097_v44  ;;  %v624_v52 = vsub.f32 %v2847_v14, %v509_v49  ;;  %v915_v39 = vadd.f32 %v2095_v22, %v2091_v28  ;;  %v512_v31 = vpop.xlane.xlu1 %511  ;;  %v2103_v21 = vpop.eup %1335  ;;  %1355 = vpow2.f32 %v769_v36 }
  0xf3   :  { %2848 = vst [vmem:[#allocation17_spill] sm:$0xff] %v2103_v21  ;;  %v625_v18 = vsub.f32 %v2849_v62, %v512_v31  ;;  %v626_v45 = vsub.f32 %v2850_v13, %v512_v31  ;;  %v2107_v4 = vpop.eup %1337  ;;  %1357 = vpow2.f32 %v771_v33  ;;  %v775_v30 = vmul.f32 1.442695, %v623_v9  ;;  %v2854_v31 = vld [vmem:[#allocation26_spill] sm:$0xff]  ;;  %v2855_v13 = vld [vmem:[#allocation27_spill] sm:$0xff] }
  0xf4   :  { %2851 = vst [vmem:[#allocation18_spill] sm:$0xff] %v2107_v4  ;;  %v777_v5 = vmul.f32 1.442695, %v624_v52  ;;  %913 = vadd.xlane.f32.xlu1 %v912_v43  ;;  %916 = vadd.xlane.f32.xlu0 %v915_v39  ;;  %v918_v49 = vadd.f32 %v2103_v21, %v2097_v44  ;;  %v2111_v53 = vpop.eup %1339  ;;  %1359 = vpow2.f32 %v773_v61  ;;  %v515_v36 = vpop.xlane.xlu0 %514  ;;  %v2857_v39 = vld [vmem:[#allocation28_spill] sm:$0xff]  ;;  %v2858_v61 = vld [vmem:[#allocation29_spill] sm:$0xff] }
  0xf5   :  { %2852 = vst [vmem:[#allocation19_spill] sm:$0xff] %v2111_v53  ;;  %v779_v14 = vmul.f32 1.442695, %v625_v18  ;;  %v781_v22 = vmul.f32 1.442695, %v626_v45  ;;  %v2113_v28 = vpop.eup %1341  ;;  %1361 = vpow2.f32 %v775_v30  ;;  %v627_v62 = vsub.f32 %v2854_v31, %v515_v36 }
  0xf6   :  { %2853 = vst [vmem:[#allocation20_spill] sm:$0xff] %v2113_v28  ;;  %v628_v33 = vsub.f32 %v2855_v13, %v515_v36  ;;  %v921_v43 = vadd.f32 %v2111_v53, %v2107_v4  ;;  %v518_v9 = vpop.xlane.xlu1 %517  ;;  %v2119_v52 = vpop.eup %1343  ;;  %1363 = vpow2.f32 %v777_v5 }
  0xf7   :  { %2856 = vst [vmem:[#allocation21_spill] sm:$0xff] %v2119_v52  ;;  %v629_v21 = vsub.f32 %v2857_v39, %v518_v9  ;;  %v630_v18 = vsub.f32 %v2858_v61, %v518_v9  ;;  %v2123_v45 = vpop.eup %1345  ;;  %1365 = vpow2.f32 %v779_v14  ;;  %v783_v44 = vmul.f32 1.442695, %v627_v62  ;;  %v2862_v9 = vld [vmem:[#allocation30_spill] sm:$0xff]  ;;  %v2863_v61 = vld [vmem:[#allocation31_spill] sm:$0xff] }
  0xf8   :  { %2859 = vst [vmem:[#allocation22_spill] sm:$0xff] %v2123_v45  ;;  %v785_v30 = vmul.f32 1.442695, %v628_v33  ;;  %919 = vadd.xlane.f32.xlu1 %v918_v49  ;;  %922 = vadd.xlane.f32.xlu0 %v921_v43  ;;  %v924_v36 = vadd.f32 %v2119_v52, %v2113_v28  ;;  %v2127_v31 = vpop.eup %1347  ;;  %1367 = vpow2.f32 %v781_v22  ;;  %v521_v5 = vpop.xlane.xlu0 %520  ;;  %v2865_v43 = vld [vmem:[#allocation32_spill] sm:$0xff]  ;;  %v2866_v22 = vld [vmem:[#allocation33_spill] sm:$0xff] }
  0xf9   :  { %2860 = vst [vmem:[#allocation23_spill] sm:$0xff] %v2127_v31  ;;  %v787_v13 = vmul.f32 1.442695, %v629_v21  ;;  %v789_v53 = vmul.f32 1.442695, %v630_v18  ;;  %v2129_v4 = vpop.eup %1349  ;;  %1369 = vpow2.f32 %v783_v44  ;;  %v631_v39 = vsub.f32 %v2862_v9, %v521_v5 }
  0xfa   :  { %2861 = vst [vmem:[#allocation24_spill] sm:$0xff] %v2129_v4  ;;  %v632_v14 = vsub.f32 %v2863_v61, %v521_v5  ;;  %v927_v49 = vadd.f32 %v2127_v31, %v2123_v45  ;;  %v524_v62 = vpop.xlane.xlu1 %523  ;;  %v2135_v33 = vpop.eup %1351  ;;  %1371 = vpow2.f32 %v785_v30 }
  0xfb   :  { %2864 = vst [vmem:[#allocation25_spill] sm:$0xff] %v2135_v33  ;;  %v633_v52 = vsub.f32 %v2865_v43, %v524_v62  ;;  %v634_v21 = vsub.f32 %v2866_v22, %v524_v62  ;;  %v2139_v18 = vpop.eup %1353  ;;  %1373 = vpow2.f32 %v787_v13  ;;  %v791_v28 = vmul.f32 1.442695, %v631_v39  ;;  %v2870_v62 = vld [vmem:[#allocation34_spill] sm:$0xff]  ;;  %v2871_v22 = vld [vmem:[#allocation35_spill] sm:$0xff] }
  0xfc   :  { %2867 = vst [vmem:[#allocation26_spill] sm:$0xff] %v2139_v18  ;;  %v793_v44 = vmul.f32 1.442695, %v632_v14  ;;  %925 = vadd.xlane.f32.xlu1 %v924_v36  ;;  %928 = vadd.xlane.f32.xlu0 %v927_v49  ;;  %v930_v5 = vadd.f32 %v2135_v33, %v2129_v4  ;;  %v2143_v9 = vpop.eup %1355  ;;  %1375 = vpow2.f32 %v789_v53  ;;  %v527_v30 = vpop.xlane.xlu0 %526  ;;  %v2873_v49 = vld [vmem:[#allocation36_spill] sm:$0xff]  ;;  %v2874_v53 = vld [vmem:[#allocation37_spill] sm:$0xff] }
  0xfd   :  { %2868 = vst [vmem:[#allocation27_spill] sm:$0xff] %v2143_v9  ;;  %v795_v61 = vmul.f32 1.442695, %v633_v52  ;;  %v797_v31 = vmul.f32 1.442695, %v634_v21  ;;  %v2145_v45 = vpop.eup %1357  ;;  %1377 = vpow2.f32 %v791_v28  ;;  %v635_v43 = vsub.f32 %v2870_v62, %v527_v30 }
  0xfe   :  { %2869 = vst [vmem:[#allocation28_spill] sm:$0xff] %v2145_v45  ;;  %v636_v13 = vsub.f32 %v2871_v22, %v527_v30  ;;  %v933_v36 = vadd.f32 %v2143_v9, %v2139_v18  ;;  %v530_v39 = vpop.xlane.xlu1 %529  ;;  %v2151_v14 = vpop.eup %1359  ;;  %1379 = vpow2.f32 %v793_v44 }
  0xff   :  { %2872 = vst [vmem:[#allocation29_spill] sm:$0xff] %v2151_v14  ;;  %v637_v33 = vsub.f32 %v2873_v49, %v530_v39  ;;  %v638_v52 = vsub.f32 %v2874_v53, %v530_v39  ;;  %v2155_v21 = vpop.eup %1361  ;;  %1381 = vpow2.f32 %v795_v61  ;;  %v799_v4 = vmul.f32 1.442695, %v635_v43  ;;  %v2878_v39 = vld [vmem:[#allocation38_spill] sm:$0xff]  ;;  %v2879_v53 = vld [vmem:[#allocation39_spill] sm:$0xff] }
 0x100   :  { %2875 = vst [vmem:[#allocation30_spill] sm:$0xff] %v2155_v21  ;;  %v801_v28 = vmul.f32 1.442695, %v636_v13  ;;  %931 = vadd.xlane.f32.xlu1 %v930_v5  ;;  %934 = vadd.xlane.f32.xlu0 %v933_v36  ;;  %v936_v30 = vadd.f32 %v2151_v14, %v2145_v45  ;;  %v2159_v62 = vpop.eup %1363  ;;  %1383 = vpow2.f32 %v797_v31  ;;  %v533_v44 = vpop.xlane.xlu0 %532  ;;  %v2881_v36 = vld [vmem:[#allocation40_spill] sm:$0xff]  ;;  %v2882_v31 = vld [vmem:[#allocation41_spill] sm:$0xff] }
 0x101   :  { %2876 = vst [vmem:[#allocation31_spill] sm:$0xff] %v2159_v62  ;;  %v803_v22 = vmul.f32 1.442695, %v637_v33  ;;  %v805_v9 = vmul.f32 1.442695, %v638_v52  ;;  %v2161_v18 = vpop.eup %1365  ;;  %1385 = vpow2.f32 %v799_v4  ;;  %v639_v49 = vsub.f32 %v2878_v39, %v533_v44 }
 0x102   :  { %2877 = vst [vmem:[#allocation32_spill] sm:$0xff] %v2161_v18  ;;  %v640_v61 = vsub.f32 %v2879_v53, %v533_v44  ;;  %v939_v5 = vadd.f32 %v2159_v62, %v2155_v21  ;;  %v536_v43 = vpop.xlane.xlu1 %535  ;;  %v2167_v13 = vpop.eup %1367  ;;  %1387 = vpow2.f32 %v801_v28 }
 0x103   :  { %2880 = vst [vmem:[#allocation33_spill] sm:$0xff] %v2167_v13  ;;  %v641_v14 = vsub.f32 %v2881_v36, %v536_v43  ;;  %v642_v33 = vsub.f32 %v2882_v31, %v536_v43  ;;  %v2171_v52 = vpop.eup %1369  ;;  %1389 = vpow2.f32 %v803_v22  ;;  %v807_v45 = vmul.f32 1.442695, %v639_v49  ;;  %v2886_v43 = vld [vmem:[#allocation42_spill] sm:$0xff]  ;;  %v2887_v31 = vld [vmem:[#allocation43_spill] sm:$0xff] }
 0x104   :  { %2883 = vst [vmem:[#allocation34_spill] sm:$0xff] %v2171_v52  ;;  %v809_v4 = vmul.f32 1.442695, %v640_v61  ;;  %937 = vadd.xlane.f32.xlu1 %v936_v30  ;;  %940 = vadd.xlane.f32.xlu0 %v939_v5  ;;  %v942_v44 = vadd.f32 %v2167_v13, %v2161_v18  ;;  %v2175_v39 = vpop.eup %1371  ;;  %1391 = vpow2.f32 %v805_v9  ;;  %v539_v28 = vpop.xlane.xlu0 %538  ;;  %v2889_v5 = vld [vmem:[#allocation44_spill] sm:$0xff]  ;;  %v2890_v9 = vld [vmem:[#allocation45_spill] sm:$0xff] }
 0x105   :  { %2884 = vst [vmem:[#allocation35_spill] sm:$0xff] %v2175_v39  ;;  %v811_v53 = vmul.f32 1.442695, %v641_v14  ;;  %v813_v62 = vmul.f32 1.442695, %v642_v33  ;;  %v2177_v21 = vpop.eup %1373  ;;  %1393 = vpow2.f32 %v807_v45  ;;  %v643_v36 = vsub.f32 %v2886_v43, %v539_v28 }
 0x106   :  { %2885 = vst [vmem:[#allocation36_spill] sm:$0xff] %v2177_v21  ;;  %v644_v22 = vsub.f32 %v2887_v31, %v539_v28  ;;  %v945_v30 = vadd.f32 %v2175_v39, %v2171_v52  ;;  %v542_v49 = vpop.xlane.xlu1 %541  ;;  %v2183_v61 = vpop.eup %1375  ;;  %1395 = vpow2.f32 %v809_v4 }
 0x107   :  { %2888 = vst [vmem:[#allocation37_spill] sm:$0xff] %v2183_v61  ;;  %v645_v13 = vsub.f32 %v2889_v5, %v542_v49  ;;  %v646_v14 = vsub.f32 %v2890_v9, %v542_v49  ;;  %v2187_v33 = vpop.eup %1377  ;;  %1397 = vpow2.f32 %v811_v53  ;;  %v815_v18 = vmul.f32 1.442695, %v643_v36  ;;  %v2893_v49 = vld [vmem:[#allocation46_spill] sm:$0xff]  ;;  %v2894_v9 = vld [vmem:[#allocation47_spill] sm:$0xff] }
 0x108   :  { %2891 = vst [vmem:[#allocation38_spill] sm:$0xff] %v2187_v33  ;;  %v817_v45 = vmul.f32 1.442695, %v644_v22  ;;  %943 = vadd.xlane.f32.xlu1 %v942_v44  ;;  %946 = vadd.xlane.f32.xlu0 %v945_v30  ;;  %v948_v28 = vadd.f32 %v2183_v61, %v2177_v21  ;;  %v2191_v43 = vpop.eup %1379  ;;  %1399 = vpow2.f32 %v813_v62  ;;  %v545_v4 = vpop.xlane.xlu0 %544  ;;  %v2895_v30 = vld [vmem:[#allocation48_spill] sm:$0xff]  ;;  %v2896_v62 = vld [vmem:[#allocation49_spill] sm:$0xff] }
 0x109   :  { %2892 = vst [vmem:[#allocation39_spill] sm:$0xff] %v2191_v43  ;;  %v819_v31 = vmul.f32 1.442695, %v645_v13  ;;  %v821_v39 = vmul.f32 1.442695, %v646_v14  ;;  %v2193_v52 = vpop.eup %1381  ;;  %1401 = vpow2.f32 %v815_v18  ;;  %v647_v5 = vsub.f32 %v2893_v49, %v545_v4 }
 0x10a   :  { %v648_v53 = vsub.f32 %v2894_v9, %v545_v4  ;;  %v951_v44 = vadd.f32 %v2191_v43, %v2187_v33  ;;  %v548_v36 = vpop.xlane.xlu1 %547  ;;  %v2199_v22 = vpop.eup %1383  ;;  %1403 = vpow2.f32 %v817_v45 }
 0x10b   :  { %v649_v61 = vsub.f32 %v2895_v30, %v548_v36  ;;  %v650_v13 = vsub.f32 %v2896_v62, %v548_v36  ;;  %v2203_v14 = vpop.eup %1385  ;;  %1405 = vpow2.f32 %v819_v31  ;;  %v823_v21 = vmul.f32 1.442695, %v647_v5  ;;  %v2898_v30 = vld [vmem:[#allocation50_spill] sm:$0xff] }
 0x10c   :  { %v825_v18 = vmul.f32 1.442695, %v648_v53  ;;  %949 = vadd.xlane.f32.xlu1 %v948_v28  ;;  %952 = vadd.xlane.f32.xlu0 %v951_v44  ;;  %v954_v4 = vadd.f32 %v2199_v22, %v2193_v52  ;;  %v2207_v49 = vpop.eup %1387  ;;  %1407 = vpow2.f32 %v821_v39  ;;  %v551_v45 = vpop.xlane.xlu0 %550 }
 0x10d   :  { %2897 = vst [vmem:[#allocation40_spill] sm:$0xff] %v2207_v49  ;;  %v827_v9 = vmul.f32 1.442695, %v649_v61  ;;  %v829_v43 = vmul.f32 1.442695, %v650_v13  ;;  %v2209_v33 = vpop.eup %1389  ;;  %1409 = vpow2.f32 %v823_v21  ;;  %v651_v36 = vsub.f32 %v1879_v32, %v551_v45 }
 0x10e   :  { %v652_v31 = vsub.f32 %v2898_v30, %v551_v45  ;;  %v957_v28 = vadd.f32 %v2207_v49, %v2203_v14  ;;  %v554_v5 = vpop.xlane.xlu1 %553  ;;  %v2215_v53 = vpop.eup %1391  ;;  %1411 = vpow2.f32 %v825_v18 }
 0x10f   :  { %v653_v44 = vsub.f32 %v1885_v58, %v554_v5  ;;  %v654_v39 = vsub.f32 %v1887_v34, %v554_v5  ;;  %v2219_v61 = vpop.eup %1393  ;;  %1413 = vpow2.f32 %v827_v9  ;;  %v831_v62 = vmul.f32 1.442695, %v651_v36 }
 0x110   :  { %v833_v21 = vmul.f32 1.442695, %v652_v31  ;;  %955 = vadd.xlane.f32.xlu1 %v954_v4  ;;  %958 = vadd.xlane.f32.xlu0 %v957_v28  ;;  %v960_v32 = vadd.f32 %v2215_v53, %v2209_v33  ;;  %v2223_v13 = vpop.eup %1395  ;;  %1415 = vpow2.f32 %v829_v43  ;;  %v557_v18 = vpop.xlane.xlu0 %556  ;;  %v2900_v43 = vld [vmem:[#allocation51_spill] sm:$0xff] }
 0x111   :  { %2899 = vst [vmem:[#allocation41_spill] sm:$0xff] %v2223_v13  ;;  %v835_v45 = vmul.f32 1.442695, %v653_v44  ;;  %v837_v30 = vmul.f32 1.442695, %v654_v39  ;;  %v2225_v49 = vpop.eup %1397  ;;  %1417 = vpow2.f32 %v831_v62  ;;  %v655_v58 = vsub.f32 %v1893_v59, %v557_v18 }
 0x112   :  { %v656_v34 = vsub.f32 %v1895_v29, %v557_v18  ;;  %v963_v4 = vadd.f32 %v2223_v13, %v2219_v61  ;;  %v560_v9 = vpop.xlane.xlu1 %559  ;;  %v2231_v36 = vpop.eup %1399  ;;  %1419 = vpow2.f32 %v833_v21 }
 0x113   :  { %v657_v31 = vsub.f32 %v1897_v7, %v560_v9  ;;  %v658_v28 = vsub.f32 %v2900_v43, %v560_v9  ;;  %v2235_v5 = vpop.eup %1401  ;;  %1421 = vpow2.f32 %v835_v45  ;;  %v839_v44 = vmul.f32 1.442695, %v655_v58  ;;  %v2902_v9 = vld [vmem:[#allocation52_spill] sm:$0xff] }
 0x114   :  { %v841_v39 = vmul.f32 1.442695, %v656_v34  ;;  %961 = vadd.xlane.f32.xlu1 %v960_v32  ;;  %964 = vadd.xlane.f32.xlu0 %v963_v4  ;;  %v966_v59 = vadd.f32 %v2231_v36, %v2225_v49  ;;  %v2239_v29 = vpop.eup %1403  ;;  %1423 = vpow2.f32 %v837_v30  ;;  %v563_v21 = vpop.xlane.xlu0 %562  ;;  %v2903_v30 = vld [vmem:[#allocation53_spill] sm:$0xff] }
 0x115   :  { %2901 = vst [vmem:[#allocation42_spill] sm:$0xff] %v2239_v29  ;;  %v843_v62 = vmul.f32 1.442695, %v657_v31  ;;  %v845_v18 = vmul.f32 1.442695, %v658_v28  ;;  %v2241_v13 = vpop.eup %1405  ;;  %1425 = vpow2.f32 %v839_v44  ;;  %v659_v7 = vsub.f32 %v1905_v23, %v563_v21 }
 0x116   :  { %v660_v45 = vsub.f32 %v2902_v9, %v563_v21  ;;  %v969_v32 = vadd.f32 %v2239_v29, %v2235_v5  ;;  %v566_v58 = vpop.xlane.xlu1 %565  ;;  %v2247_v34 = vpop.eup %1407  ;;  %1427 = vpow2.f32 %v841_v39 }
 0x117   :  { %v661_v4 = vsub.f32 %v1909_v2, %v566_v58  ;;  %v662_v31 = vsub.f32 %v2903_v30, %v566_v58  ;;  %v2251_v43 = vpop.eup %1409  ;;  %1429 = vpow2.f32 %v843_v62  ;;  %v847_v28 = vmul.f32 1.442695, %v659_v7 }
 0x118   :  { %v849_v44 = vmul.f32 1.442695, %v660_v45  ;;  %967 = vadd.xlane.f32.xlu1 %v966_v59  ;;  %970 = vadd.xlane.f32.xlu0 %v969_v32  ;;  %v972_v23 = vadd.f32 %v2247_v34, %v2241_v13  ;;  %v2255_v21 = vpop.eup %1411  ;;  %1431 = vpow2.f32 %v845_v18 }
 0x119   :  { %v851_v9 = vmul.f32 1.442695, %v661_v4  ;;  %v853_v29 = vmul.f32 1.442695, %v662_v31  ;;  %v2257_v39 = vpop.eup %1413  ;;  %1433 = vpow2.f32 %v847_v28  ;;  %v975_v2 = vadd.f32 %v2255_v21, %v2251_v43 }
 0x11a   :  { %v2261_v58 = vpop.eup %1415  ;;  %1435 = vpow2.f32 %v849_v44 }
 0x11b   :  { %v2263_v62 = vpop.eup %1417  ;;  %1437 = vpow2.f32 %v851_v9  ;;  %v978_v59 = vadd.f32 %v2261_v58, %v2257_v39 }
 0x11c   :  { %973 = vadd.xlane.f32.xlu1 %v972_v23  ;;  %976 = vadd.xlane.f32.xlu0 %v975_v2  ;;  %v2267_v18 = vpop.eup %1419  ;;  %1439 = vpow2.f32 %v853_v29 }
 0x11d   :  { %v2269_v7 = vpop.eup %1421  ;;  %v981_v45 = vadd.f32 %v2267_v18, %v2263_v62 }
 0x11e   :  { %2904 = vst [vmem:[#allocation43_spill] sm:$0xff] %v2269_v7  ;;  %v2273_v32 = vpop.eup %1423 }
 0x11f   :  { %2905 = vst [vmem:[#allocation44_spill] sm:$0xff] %v2273_v32  ;;  %v2275_v4 = vpop.eup %1425  ;;  %v984_v30 = vadd.f32 %v2273_v32, %v2269_v7 }
 0x120   :  { %2906 = vst [vmem:[#allocation45_spill] sm:$0xff] %v2275_v4  ;;  %979 = vadd.xlane.f32.xlu1 %v978_v59  ;;  %982 = vadd.xlane.f32.xlu0 %v981_v45  ;;  %v2279_v31 = vpop.eup %1427 }
 0x121   :  { %2907 = vst [vmem:[#allocation46_spill] sm:$0xff] %v2279_v31  ;;  %v2281_v28 = vpop.eup %1429  ;;  %v987_v29 = vadd.f32 %v2279_v31, %v2275_v4 }
 0x122   :  { %2908 = vst [vmem:[#allocation47_spill] sm:$0xff] %v2281_v28  ;;  %v2285_v44 = vpop.eup %1431 }
 0x123   :  { %2909 = vst [vmem:[#allocation48_spill] sm:$0xff] %v2285_v44  ;;  %v2287_v23 = vpop.eup %1433  ;;  %v990_v9 = vadd.f32 %v2285_v44, %v2281_v28 }
 0x124   :  { %2910 = vst [vmem:[#allocation49_spill] sm:$0xff] %v2287_v23  ;;  %985 = vadd.xlane.f32.xlu1 %v984_v30  ;;  %988 = vadd.xlane.f32.xlu0 %v987_v29  ;;  %v2291_v2 = vpop.eup %1435 }
 0x125   :  { %2911 = vst [vmem:[#allocation50_spill] sm:$0xff] %v2291_v2  ;;  %v2293_v59 = vpop.eup %1437  ;;  %v993_v45 = vadd.f32 %v2291_v2, %v2287_v23 }
 0x126   :  { %v2297_v32 = vpop.eup %1439 }
 0x127   :  { %v996_v31 = vadd.f32 %v2297_v32, %v2293_v59 }
 0x128   :  { %991 = vadd.xlane.f32.xlu1 %v990_v9  ;;  %994 = vadd.xlane.f32.xlu0 %v993_v45 }
 0x12c   :  { %997 = vadd.xlane.f32.xlu1 %v996_v31 }
 0x159   :  { %v857_v30 = vpop.xlane.xlu0 %856 }
 0x15a   :  { %1441 = vrcp.f32 %v857_v30 }
 0x15d   :  { %v860_v29 = vpop.xlane.xlu1 %859  ;;  %v863_v4 = vpop.xlane.xlu0 %862 }
 0x15e   :  { %1443 = vrcp.f32 %v860_v29 }
 0x15f   :  { %1445 = vrcp.f32 %v863_v4 }
 0x161   :  { %v866_v44 = vpop.xlane.xlu1 %865  ;;  %v869_v28 = vpop.xlane.xlu0 %868 }
 0x162   :  { %1447 = vrcp.f32 %v866_v44 }
 0x163   :  { %1449 = vrcp.f32 %v869_v28 }
 0x164   :  { %v1442_v7 = vpop.eup %1441 }
 0x165   :  { %v1000_v2 = vmul.f32 %v1442_v7, %v1933_v63  ;;  %v1001_v9 = vmul.f32 %v1442_v7, %v1935_v50  ;;  %v872_v45 = vpop.xlane.xlu1 %871  ;;  %v875_v23 = vpop.xlane.xlu0 %874 }
 0x166   :  { %1451 = vrcp.f32 %v872_v45 }
 0x167   :  { %1143 = vst [vmem:[%s2687_s2] sm:$0xff] %v1000_v2  ;;  %1144 = vst [vmem:[%s2687_s2 + $0x8] sm:$0xff] %v1001_v9  ;;  %1453 = vrcp.f32 %v875_v23 }
 0x168   :  { %v1444_v4 = vpop.eup %1443 }
 0x169   :  { %v1446_v31 = vpop.eup %1445  ;;  %v1003_v28 = vmul.f32 %v1444_v4, %v1947_v51  ;;  %v1004_v63 = vmul.f32 %v1444_v4, %v1951_v0  ;;  %v878_v44 = vpop.xlane.xlu1 %877 }
 0x16a   :  { %v881_v50 = vpop.xlane.xlu0 %880  ;;  %v1006_v7 = vmul.f32 %v1446_v31, %v1937_v48  ;;  %v1007_v30 = vmul.f32 %v1446_v31, %v1943_v15  ;;  %1455 = vrcp.f32 %v878_v44 }
 0x16b   :  { %1145 = vst [vmem:[%s2687_s2 + $0x10] sm:$0xff] %v1003_v28  ;;  %1146 = vst [vmem:[%s2687_s2 + $0x18] sm:$0xff] %v1004_v63  ;;  %1457 = vrcp.f32 %v881_v50 }
 0x16c   :  { %v1448_v23 = vpop.eup %1447  ;;  %1147 = vst [vmem:[%s2687_s2 + $0x20] sm:$0xff] %v1006_v7  ;;  %1148 = vst [vmem:[%s2687_s2 + $0x28] sm:$0xff] %v1007_v30 }
 0x16d   :  { %v1450_v48 = vpop.eup %1449  ;;  %v1009_v15 = vmul.f32 %v1448_v23, %v1953_v8  ;;  %v1010_v51 = vmul.f32 %v1448_v23, %v1959_v42  ;;  %v884_v0 = vpop.xlane.xlu1 %883 }
 0x16e   :  { %v887_v2 = vpop.xlane.xlu0 %886  ;;  %v1012_v29 = vmul.f32 %v1450_v48, %v1963_v20  ;;  %v1013_v9 = vmul.f32 %v1450_v48, %v1967_v19  ;;  %1459 = vrcp.f32 %v884_v0 }
 0x16f   :  { %1149 = vst [vmem:[%s2687_s2 + $0x30] sm:$0xff] %v1009_v15  ;;  %1150 = vst [vmem:[%s2687_s2 + $0x38] sm:$0xff] %v1010_v51  ;;  %1461 = vrcp.f32 %v887_v2 }
 0x170   :  { %v1452_v45 = vpop.eup %1451  ;;  %1151 = vst [vmem:[%s2687_s2 + $0x40] sm:$0xff] %v1012_v29  ;;  %1152 = vst [vmem:[%s2687_s2 + $0x48] sm:$0xff] %v1013_v9 }
 0x171   :  { %v1454_v8 = vpop.eup %1453  ;;  %v1015_v42 = vmul.f32 %v1452_v45, %v1969_v10  ;;  %v1016_v20 = vmul.f32 %v1452_v45, %v1975_v56  ;;  %v890_v19 = vpop.xlane.xlu1 %889 }
 0x172   :  { %v893_v4 = vpop.xlane.xlu0 %892  ;;  %v1018_v31 = vmul.f32 %v1454_v8, %v1979_v25  ;;  %v1019_v28 = vmul.f32 %v1454_v8, %v1983_v41  ;;  %1463 = vrcp.f32 %v890_v19 }
 0x173   :  { %1153 = vst [vmem:[%s2687_s2 + $0x50] sm:$0xff] %v1015_v42  ;;  %1154 = vst [vmem:[%s2687_s2 + $0x58] sm:$0xff] %v1016_v20  ;;  %1465 = vrcp.f32 %v893_v4 }
 0x174   :  { %v1456_v63 = vpop.eup %1455  ;;  %1155 = vst [vmem:[%s2687_s2 + $0x60] sm:$0xff] %v1018_v31  ;;  %1156 = vst [vmem:[%s2687_s2 + $0x68] sm:$0xff] %v1019_v28 }
 0x175   :  { %v1458_v10 = vpop.eup %1457  ;;  %v1021_v56 = vmul.f32 %v1456_v63, %v1985_v27  ;;  %v1022_v25 = vmul.f32 %v1456_v63, %v1991_v11  ;;  %v896_v41 = vpop.xlane.xlu1 %895 }
 0x176   :  { %v899_v44 = vpop.xlane.xlu0 %898  ;;  %v1024_v50 = vmul.f32 %v1458_v10, %v1995_v1  ;;  %v1025_v7 = vmul.f32 %v1458_v10, %v1999_v55  ;;  %1467 = vrcp.f32 %v896_v41 }
 0x177   :  { %1157 = vst [vmem:[%s2687_s2 + $0x70] sm:$0xff] %v1021_v56  ;;  %1158 = vst [vmem:[%s2687_s2 + $0x78] sm:$0xff] %v1022_v25  ;;  %1469 = vrcp.f32 %v899_v44  ;;  %v2914_v25 = vld [vmem:[#allocation10_spill] sm:$0xff]  ;;  %v2915_v44 = vld [vmem:[#allocation11_spill] sm:$0xff] }
 0x178   :  { %v1460_v30 = vpop.eup %1459  ;;  %1159 = vst [vmem:[%s2687_s2 + $0x80] sm:$0xff] %v1024_v50  ;;  %1160 = vst [vmem:[%s2687_s2 + $0x88] sm:$0xff] %v1025_v7 }
 0x179   :  { %v1462_v27 = vpop.eup %1461  ;;  %v1027_v11 = vmul.f32 %v1460_v30, %v2001_v37  ;;  %v1028_v1 = vmul.f32 %v1460_v30, %v2007_v26  ;;  %v902_v55 = vpop.xlane.xlu1 %901 }
 0x17a   :  { %v905_v23 = vpop.xlane.xlu0 %904  ;;  %v1030_v48 = vmul.f32 %v1462_v27, %v2011_v57  ;;  %v1031_v15 = vmul.f32 %v1462_v27, %v2015_v16  ;;  %1471 = vrcp.f32 %v902_v55  ;;  %v2916_v27 = vld [vmem:[#allocation12_spill] sm:$0xff] }
 0x17b   :  { %1161 = vst [vmem:[%s2687_s2 + $0x90] sm:$0xff] %v1027_v11  ;;  %1162 = vst [vmem:[%s2687_s2 + $0x98] sm:$0xff] %v1028_v1  ;;  %1473 = vrcp.f32 %v905_v23  ;;  %v2917_v1 = vld [vmem:[#allocation13_spill] sm:$0xff] }
 0x17c   :  { %v1464_v51 = vpop.eup %1463  ;;  %1163 = vst [vmem:[%s2687_s2 + $0xa0] sm:$0xff] %v1030_v48  ;;  %1164 = vst [vmem:[%s2687_s2 + $0xa8] sm:$0xff] %v1031_v15  ;;  %v2918_v15 = vld [vmem:[#allocation14_spill] sm:$0xff] }
 0x17d   :  { %v1466_v37 = vpop.eup %1465  ;;  %v1033_v26 = vmul.f32 %v1464_v51, %v2017_v60  ;;  %v1034_v57 = vmul.f32 %v1464_v51, %v2023_v46  ;;  %v908_v16 = vpop.xlane.xlu1 %907 }
 0x17e   :  { %v911_v0 = vpop.xlane.xlu0 %910  ;;  %v1036_v2 = vmul.f32 %v1466_v37, %v2027_v40  ;;  %v1037_v29 = vmul.f32 %v1466_v37, %v2031_v47  ;;  %1475 = vrcp.f32 %v908_v16  ;;  %v2919_v37 = vld [vmem:[#allocation15_spill] sm:$0xff] }
 0x17f   :  { %1165 = vst [vmem:[%s2687_s2 + $0xb0] sm:$0xff] %v1033_v26  ;;  %1166 = vst [vmem:[%s2687_s2 + $0xb8] sm:$0xff] %v1034_v57  ;;  %1477 = vrcp.f32 %v911_v0  ;;  %v2920_v0 = vld [vmem:[#allocation16_spill] sm:$0xff] }
 0x180   :  { %v1468_v9 = vpop.eup %1467  ;;  %1167 = vst [vmem:[%s2687_s2 + $0xc0] sm:$0xff] %v1036_v2  ;;  %1168 = vst [vmem:[%s2687_s2 + $0xc8] sm:$0xff] %v1037_v29  ;;  %v2921_v29 = vld [vmem:[#allocation17_spill] sm:$0xff] }
 0x181   :  { %v1470_v60 = vpop.eup %1469  ;;  %v1039_v46 = vmul.f32 %v1468_v9, %v2033_v17  ;;  %v1040_v40 = vmul.f32 %v1468_v9, %v2039_v3  ;;  %v914_v47 = vpop.xlane.xlu1 %913 }
 0x182   :  { %v917_v45 = vpop.xlane.xlu0 %916  ;;  %v1042_v8 = vmul.f32 %v1470_v60, %v2043_v38  ;;  %v1043_v42 = vmul.f32 %v1470_v60, %v2047_v12  ;;  %1479 = vrcp.f32 %v914_v47 }
 0x183   :  { %1169 = vst [vmem:[%s2687_s2 + $0xd0] sm:$0xff] %v1039_v46  ;;  %1170 = vst [vmem:[%s2687_s2 + $0xd8] sm:$0xff] %v1040_v40  ;;  %1481 = vrcp.f32 %v917_v45  ;;  %v2922_v40 = vld [vmem:[#allocation18_spill] sm:$0xff]  ;;  %v2923_v45 = vld [vmem:[#allocation19_spill] sm:$0xff] }
 0x184   :  { %v1472_v20 = vpop.eup %1471  ;;  %1171 = vst [vmem:[%s2687_s2 + $0xe0] sm:$0xff] %v1042_v8  ;;  %1172 = vst [vmem:[%s2687_s2 + $0xe8] sm:$0xff] %v1043_v42 }
 0x185   :  { %v1474_v17 = vpop.eup %1473  ;;  %v1045_v3 = vmul.f32 %v1472_v20, %v2049_v24  ;;  %v1046_v38 = vmul.f32 %v1472_v20, %v2055_v35  ;;  %v920_v12 = vpop.xlane.xlu1 %919  ;;  %v2912_v35 = vld [vmem:[#allocation8_spill] sm:$0xff] }
 0x186   :  { %v923_v19 = vpop.xlane.xlu0 %922  ;;  %v1048_v4 = vmul.f32 %v1474_v17, %v2059_v54  ;;  %v1049_v31 = vmul.f32 %v1474_v17, %v2063_v6  ;;  %1483 = vrcp.f32 %v920_v12  ;;  %v2913_v6 = vld [vmem:[#allocation9_spill] sm:$0xff]  ;;  %v2924_v17 = vld [vmem:[#allocation20_spill] sm:$0xff] }
 0x187   :  { %1173 = vst [vmem:[%s2687_s2 + $0xf0] sm:$0xff] %v1045_v3  ;;  %1174 = vst [vmem:[%s2687_s2 + $0xf8] sm:$0xff] %v1046_v38  ;;  %1485 = vrcp.f32 %v923_v19  ;;  %v2925_v38 = vld [vmem:[#allocation21_spill] sm:$0xff] }
 0x188   :  { %v1476_v28 = vpop.eup %1475  ;;  %1175 = vst [vmem:[%s2687_s2 + $0x100] sm:$0xff] %v1048_v4  ;;  %1176 = vst [vmem:[%s2687_s2 + $0x108] sm:$0xff] %v1049_v31  ;;  %v2926_v31 = vld [vmem:[#allocation22_spill] sm:$0xff] }
 0x189   :  { %v1478_v24 = vpop.eup %1477  ;;  %v1051_v54 = vmul.f32 %v1476_v28, %v2912_v35  ;;  %v1052_v63 = vmul.f32 %v1476_v28, %v2913_v6  ;;  %v926_v10 = vpop.xlane.xlu1 %925 }
 0x18a   :  { %v929_v56 = vpop.xlane.xlu0 %928  ;;  %v1054_v41 = vmul.f32 %v1478_v24, %v2914_v25  ;;  %v1055_v50 = vmul.f32 %v1478_v24, %v2915_v44  ;;  %1487 = vrcp.f32 %v926_v10  ;;  %v2927_v24 = vld [vmem:[#allocation23_spill] sm:$0xff] }
 0x18b   :  { %1177 = vst [vmem:[%s2687_s2 + $0x110] sm:$0xff] %v1051_v54  ;;  %1178 = vst [vmem:[%s2687_s2 + $0x118] sm:$0xff] %v1052_v63  ;;  %1489 = vrcp.f32 %v929_v56  ;;  %v2928_v63 = vld [vmem:[#allocation24_spill] sm:$0xff]  ;;  %v2929_v56 = vld [vmem:[#allocation25_spill] sm:$0xff] }
 0x18c   :  { %v1480_v7 = vpop.eup %1479  ;;  %1179 = vst [vmem:[%s2687_s2 + $0x120] sm:$0xff] %v1054_v41  ;;  %1180 = vst [vmem:[%s2687_s2 + $0x128] sm:$0xff] %v1055_v50  ;;  %v2930_v50 = vld [vmem:[#allocation26_spill] sm:$0xff] }
 0x18d   :  { %v1482_v30 = vpop.eup %1481  ;;  %v1057_v11 = vmul.f32 %v1480_v7, %v2916_v27  ;;  %v1058_v55 = vmul.f32 %v1480_v7, %v2917_v1  ;;  %v932_v23 = vpop.xlane.xlu1 %931 }
 0x18e   :  { %v935_v48 = vpop.xlane.xlu0 %934  ;;  %v1060_v51 = vmul.f32 %v1482_v30, %v2918_v15  ;;  %v1061_v26 = vmul.f32 %v1482_v30, %v2919_v37  ;;  %1491 = vrcp.f32 %v932_v23  ;;  %v2931_v30 = vld [vmem:[#allocation27_spill] sm:$0xff] }
 0x18f   :  { %1181 = vst [vmem:[%s2687_s2 + $0x130] sm:$0xff] %v1057_v11  ;;  %1182 = vst [vmem:[%s2687_s2 + $0x138] sm:$0xff] %v1058_v55  ;;  %1493 = vrcp.f32 %v935_v48  ;;  %v2932_v55 = vld [vmem:[#allocation28_spill] sm:$0xff]  ;;  %v2933_v48 = vld [vmem:[#allocation29_spill] sm:$0xff] }
 0x190   :  { %v1484_v57 = vpop.eup %1483  ;;  %1183 = vst [vmem:[%s2687_s2 + $0x140] sm:$0xff] %v1060_v51  ;;  %1184 = vst [vmem:[%s2687_s2 + $0x148] sm:$0xff] %v1061_v26  ;;  %v2934_v26 = vld [vmem:[#allocation30_spill] sm:$0xff] }
 0x191   :  { %v1486_v16 = vpop.eup %1485  ;;  %v1063_v2 = vmul.f32 %v1484_v57, %v2920_v0  ;;  %v1064_v9 = vmul.f32 %v1484_v57, %v2921_v29  ;;  %v938_v60 = vpop.xlane.xlu1 %937 }
 0x192   :  { %v941_v46 = vpop.xlane.xlu0 %940  ;;  %v1066_v47 = vmul.f32 %v1486_v16, %v2922_v40  ;;  %v1067_v8 = vmul.f32 %v1486_v16, %v2923_v45  ;;  %1495 = vrcp.f32 %v938_v60  ;;  %v2935_v16 = vld [vmem:[#allocation31_spill] sm:$0xff] }
 0x193   :  { %1185 = vst [vmem:[%s2687_s2 + $0x150] sm:$0xff] %v1063_v2  ;;  %1186 = vst [vmem:[%s2687_s2 + $0x158] sm:$0xff] %v1064_v9  ;;  %1497 = vrcp.f32 %v941_v46  ;;  %v2936_v9 = vld [vmem:[#allocation32_spill] sm:$0xff]  ;;  %v2937_v46 = vld [vmem:[#allocation33_spill] sm:$0xff] }
 0x194   :  { %v1488_v42 = vpop.eup %1487  ;;  %1187 = vst [vmem:[%s2687_s2 + $0x160] sm:$0xff] %v1066_v47  ;;  %1188 = vst [vmem:[%s2687_s2 + $0x168] sm:$0xff] %v1067_v8  ;;  %v2938_v8 = vld [vmem:[#allocation34_spill] sm:$0xff] }
 0x195   :  { %v1490_v20 = vpop.eup %1489  ;;  %v1069_v3 = vmul.f32 %v1488_v42, %v2924_v17  ;;  %v1070_v12 = vmul.f32 %v1488_v42, %v2925_v38  ;;  %v944_v19 = vpop.xlane.xlu1 %943 }
 0x196   :  { %v947_v4 = vpop.xlane.xlu0 %946  ;;  %v1072_v28 = vmul.f32 %v1490_v20, %v2926_v31  ;;  %v1073_v35 = vmul.f32 %v1490_v20, %v2927_v24  ;;  %1499 = vrcp.f32 %v944_v19  ;;  %v2939_v20 = vld [vmem:[#allocation35_spill] sm:$0xff] }
 0x197   :  { %1189 = vst [vmem:[%s2687_s2 + $0x170] sm:$0xff] %v1069_v3  ;;  %1190 = vst [vmem:[%s2687_s2 + $0x178] sm:$0xff] %v1070_v12  ;;  %1501 = vrcp.f32 %v947_v4  ;;  %v2940_v12 = vld [vmem:[#allocation36_spill] sm:$0xff]  ;;  %v2941_v4 = vld [vmem:[#allocation37_spill] sm:$0xff] }
 0x198   :  { %v1492_v54 = vpop.eup %1491  ;;  %1191 = vst [vmem:[%s2687_s2 + $0x180] sm:$0xff] %v1072_v28  ;;  %1192 = vst [vmem:[%s2687_s2 + $0x188] sm:$0xff] %v1073_v35  ;;  %v2942_v35 = vld [vmem:[#allocation38_spill] sm:$0xff] }
 0x199   :  { %v1494_v6 = vpop.eup %1493  ;;  %v1075_v10 = vmul.f32 %v1492_v54, %v2928_v63  ;;  %v1076_v25 = vmul.f32 %v1492_v54, %v2929_v56  ;;  %v950_v41 = vpop.xlane.xlu1 %949 }
 0x19a   :  { %v953_v44 = vpop.xlane.xlu0 %952  ;;  %v1078_v7 = vmul.f32 %v1494_v6, %v2930_v50  ;;  %v1079_v27 = vmul.f32 %v1494_v6, %v2931_v30  ;;  %1503 = vrcp.f32 %v950_v41  ;;  %v2943_v6 = vld [vmem:[#allocation39_spill] sm:$0xff]  ;;  %v2944_v30 = vld [vmem:[#allocation40_spill] sm:$0xff] }
 0x19b   :  { %1193 = vst [vmem:[%s2687_s2 + $0x190] sm:$0xff] %v1075_v10  ;;  %1194 = vst [vmem:[%s2687_s2 + $0x198] sm:$0xff] %v1076_v25  ;;  %1505 = vrcp.f32 %v953_v44 }
 0x19c   :  { %v1496_v11 = vpop.eup %1495  ;;  %1195 = vst [vmem:[%s2687_s2 + $0x1a0] sm:$0xff] %v1078_v7  ;;  %1196 = vst [vmem:[%s2687_s2 + $0x1a8] sm:$0xff] %v1079_v27 }
 0x19d   :  { %v1498_v1 = vpop.eup %1497  ;;  %v1081_v23 = vmul.f32 %v1496_v11, %v2932_v55  ;;  %v1082_v15 = vmul.f32 %v1496_v11, %v2933_v48  ;;  %v956_v51 = vpop.xlane.xlu1 %955  ;;  %v2945_v48 = vld [vmem:[#allocation41_spill] sm:$0xff] }
 0x19e   :  { %v959_v37 = vpop.xlane.xlu0 %958  ;;  %v1084_v57 = vmul.f32 %v1498_v1, %v2934_v26  ;;  %v1085_v0 = vmul.f32 %v1498_v1, %v2935_v16  ;;  %1507 = vrcp.f32 %v956_v51  ;;  %v2946_v16 = vld [vmem:[#allocation42_spill] sm:$0xff] }
 0x19f   :  { %1197 = vst [vmem:[%s2687_s2 + $0x1b0] sm:$0xff] %v1081_v23  ;;  %1198 = vst [vmem:[%s2687_s2 + $0x1b8] sm:$0xff] %v1082_v15  ;;  %1509 = vrcp.f32 %v959_v37 }
 0x1a0   :  { %v1500_v2 = vpop.eup %1499  ;;  %1199 = vst [vmem:[%s2687_s2 + $0x1c0] sm:$0xff] %v1084_v57  ;;  %1200 = vst [vmem:[%s2687_s2 + $0x1c8] sm:$0xff] %v1085_v0 }
 0x1a1   :  { %v1502_v29 = vpop.eup %1501  ;;  %v1087_v60 = vmul.f32 %v1500_v2, %v2936_v9  ;;  %v1088_v40 = vmul.f32 %v1500_v2, %v2937_v46  ;;  %v962_v47 = vpop.xlane.xlu1 %961 }
 0x1a2   :  { %v965_v45 = vpop.xlane.xlu0 %964  ;;  %v1090_v42 = vmul.f32 %v1502_v29, %v2938_v8  ;;  %v1091_v17 = vmul.f32 %v1502_v29, %v2939_v20  ;;  %1511 = vrcp.f32 %v962_v47  ;;  %v2949_v20 = vld [vmem:[#allocation45_spill] sm:$0xff] }
 0x1a3   :  { %1201 = vst [vmem:[%s2687_s2 + $0x1d0] sm:$0xff] %v1087_v60  ;;  %1202 = vst [vmem:[%s2687_s2 + $0x1d8] sm:$0xff] %v1088_v40  ;;  %1513 = vrcp.f32 %v965_v45 }
 0x1a4   :  { %v1504_v3 = vpop.eup %1503  ;;  %1203 = vst [vmem:[%s2687_s2 + $0x1e0] sm:$0xff] %v1090_v42  ;;  %1204 = vst [vmem:[%s2687_s2 + $0x1e8] sm:$0xff] %v1091_v17 }
 0x1a5   :  { %v1506_v38 = vpop.eup %1505  ;;  %v1093_v19 = vmul.f32 %v1504_v3, %v2940_v12  ;;  %v1094_v31 = vmul.f32 %v1504_v3, %v2941_v4  ;;  %v968_v28 = vpop.xlane.xlu1 %967  ;;  %v2950_v3 = vld [vmem:[#allocation46_spill] sm:$0xff]  ;;  %v2951_v4 = vld [vmem:[#allocation47_spill] sm:$0xff] }
 0x1a6   :  { %v971_v24 = vpop.xlane.xlu0 %970  ;;  %v1096_v54 = vmul.f32 %v1506_v38, %v2942_v35  ;;  %v1097_v63 = vmul.f32 %v1506_v38, %v2943_v6  ;;  %1515 = vrcp.f32 %v968_v28  ;;  %v2952_v28 = vld [vmem:[#allocation48_spill] sm:$0xff]  ;;  %v2953_v35 = vld [vmem:[#allocation49_spill] sm:$0xff]  ;;  %v2954_v6 = vld [vmem:[#allocation50_spill] sm:$0xff] }
 0x1a7   :  { %1205 = vst [vmem:[%s2687_s2 + $0x1f0] sm:$0xff] %v1093_v19  ;;  %1206 = vst [vmem:[%s2687_s2 + $0x1f8] sm:$0xff] %v1094_v31  ;;  %1517 = vrcp.f32 %v971_v24 }
 0x1a8   :  { %v1508_v10 = vpop.eup %1507  ;;  %1207 = vst [vmem:[%s2687_s2 + $0x200] sm:$0xff] %v1096_v54  ;;  %1208 = vst [vmem:[%s2687_s2 + $0x208] sm:$0xff] %v1097_v63 }
 0x1a9   :  { %v1510_v56 = vpop.eup %1509  ;;  %v1099_v25 = vmul.f32 %v1508_v10, %v2193_v52  ;;  %v1100_v41 = vmul.f32 %v1508_v10, %v2199_v22  ;;  %v974_v44 = vpop.xlane.xlu1 %973 }
 0x1aa   :  { %v977_v50 = vpop.xlane.xlu0 %976  ;;  %v1102_v7 = vmul.f32 %v1510_v56, %v2203_v14  ;;  %v1103_v27 = vmul.f32 %v1510_v56, %v2944_v30  ;;  %1519 = vrcp.f32 %v974_v44 }
 0x1ab   :  { %1209 = vst [vmem:[%s2687_s2 + $0x210] sm:$0xff] %v1099_v25  ;;  %1210 = vst [vmem:[%s2687_s2 + $0x218] sm:$0xff] %v1100_v41  ;;  %1521 = vrcp.f32 %v977_v50 }
 0x1ac   :  { %v1512_v11 = vpop.eup %1511  ;;  %1211 = vst [vmem:[%s2687_s2 + $0x220] sm:$0xff] %v1102_v7  ;;  %1212 = vst [vmem:[%s2687_s2 + $0x228] sm:$0xff] %v1103_v27 }
 0x1ad   :  { %v1514_v52 = vpop.eup %1513  ;;  %v1105_v22 = vmul.f32 %v1512_v11, %v2209_v33  ;;  %v1106_v14 = vmul.f32 %v1512_v11, %v2215_v53  ;;  %v980_v1 = vpop.xlane.xlu1 %979 }
 0x1ae   :  { %v983_v55 = vpop.xlane.xlu0 %982  ;;  %v1108_v23 = vmul.f32 %v1514_v52, %v2219_v61  ;;  %v1109_v15 = vmul.f32 %v1514_v52, %v2945_v48  ;;  %1523 = vrcp.f32 %v980_v1 }
 0x1af   :  { %1213 = vst [vmem:[%s2687_s2 + $0x230] sm:$0xff] %v1105_v22  ;;  %1214 = vst [vmem:[%s2687_s2 + $0x238] sm:$0xff] %v1106_v14  ;;  %1525 = vrcp.f32 %v983_v55 }
 0x1b0   :  { %v1516_v51 = vpop.eup %1515  ;;  %1215 = vst [vmem:[%s2687_s2 + $0x240] sm:$0xff] %v1108_v23  ;;  %1216 = vst [vmem:[%s2687_s2 + $0x248] sm:$0xff] %v1109_v15 }
 0x1b1   :  { %v1518_v33 = vpop.eup %1517  ;;  %v1111_v53 = vmul.f32 %v1516_v51, %v2225_v49  ;;  %v1112_v61 = vmul.f32 %v1516_v51, %v2231_v36  ;;  %v986_v37 = vpop.xlane.xlu1 %985 }
 0x1b2   :  { %v989_v26 = vpop.xlane.xlu0 %988  ;;  %v1114_v57 = vmul.f32 %v1518_v33, %v2235_v5  ;;  %v1115_v0 = vmul.f32 %v1518_v33, %v2946_v16  ;;  %1527 = vrcp.f32 %v986_v37 }
 0x1b3   :  { %1217 = vst [vmem:[%s2687_s2 + $0x250] sm:$0xff] %v1111_v53  ;;  %1218 = vst [vmem:[%s2687_s2 + $0x258] sm:$0xff] %v1112_v61  ;;  %1529 = vrcp.f32 %v989_v26 }
 0x1b4   :  { %v1520_v2 = vpop.eup %1519  ;;  %1219 = vst [vmem:[%s2687_s2 + $0x260] sm:$0xff] %v1114_v57  ;;  %1220 = vst [vmem:[%s2687_s2 + $0x268] sm:$0xff] %v1115_v0 }
 0x1b5   :  { %v1522_v49 = vpop.eup %1521  ;;  %v1117_v36 = vmul.f32 %v1520_v2, %v2241_v13  ;;  %v1118_v5 = vmul.f32 %v1520_v2, %v2247_v34  ;;  %v992_v29 = vpop.xlane.xlu1 %991 }
 0x1b6   :  { %v995_v9 = vpop.xlane.xlu0 %994  ;;  %v1120_v60 = vmul.f32 %v1522_v49, %v2251_v43  ;;  %v1121_v46 = vmul.f32 %v1522_v49, %v2255_v21  ;;  %1531 = vrcp.f32 %v992_v29 }
 0x1b7   :  { %1221 = vst [vmem:[%s2687_s2 + $0x270] sm:$0xff] %v1117_v36  ;;  %1222 = vst [vmem:[%s2687_s2 + $0x278] sm:$0xff] %v1118_v5  ;;  %1533 = vrcp.f32 %v995_v9 }
 0x1b8   :  { %v1524_v40 = vpop.eup %1523  ;;  %1223 = vst [vmem:[%s2687_s2 + $0x280] sm:$0xff] %v1120_v60  ;;  %1224 = vst [vmem:[%s2687_s2 + $0x288] sm:$0xff] %v1121_v46 }
 0x1b9   :  { %v1526_v13 = vpop.eup %1525  ;;  %v1123_v34 = vmul.f32 %v1524_v40, %v2257_v39  ;;  %v1124_v43 = vmul.f32 %v1524_v40, %v2261_v58  ;;  %v998_v21 = vpop.xlane.xlu1 %997  ;;  %v2947_v58 = vld [vmem:[#allocation43_spill] sm:$0xff] }
 0x1ba   :  { %v1126_v47 = vmul.f32 %v1526_v13, %v2263_v62  ;;  %v1127_v45 = vmul.f32 %v1526_v13, %v2267_v18  ;;  %1535 = vrcp.f32 %v998_v21  ;;  %v2948_v18 = vld [vmem:[#allocation44_spill] sm:$0xff] }
 0x1bb   :  { %1225 = vst [vmem:[%s2687_s2 + $0x290] sm:$0xff] %v1123_v34  ;;  %1226 = vst [vmem:[%s2687_s2 + $0x298] sm:$0xff] %v1124_v43 }
 0x1bc   :  { %v1528_v8 = vpop.eup %1527  ;;  %1227 = vst [vmem:[%s2687_s2 + $0x2a0] sm:$0xff] %v1126_v47  ;;  %1228 = vst [vmem:[%s2687_s2 + $0x2a8] sm:$0xff] %v1127_v45 }
 0x1bd   :  { %v1530_v39 = vpop.eup %1529  ;;  %v1129_v62 = vmul.f32 %v1528_v8, %v2947_v58  ;;  %v1130_v42 = vmul.f32 %v1528_v8, %v2948_v18 }
 0x1be   :  { %v1132_v17 = vmul.f32 %v1530_v39, %v2949_v20  ;;  %v1133_v38 = vmul.f32 %v1530_v39, %v2950_v3 }
 0x1bf   :  { %1229 = vst [vmem:[%s2687_s2 + $0x2b0] sm:$0xff] %v1129_v62  ;;  %1230 = vst [vmem:[%s2687_s2 + $0x2b8] sm:$0xff] %v1130_v42 }
 0x1c0   :  { %v1532_v12 = vpop.eup %1531  ;;  %1231 = vst [vmem:[%s2687_s2 + $0x2c0] sm:$0xff] %v1132_v17  ;;  %1232 = vst [vmem:[%s2687_s2 + $0x2c8] sm:$0xff] %v1133_v38 }
 0x1c1   :  { %v1534_v19 = vpop.eup %1533  ;;  %v1135_v31 = vmul.f32 %v1532_v12, %v2951_v4  ;;  %v1136_v24 = vmul.f32 %v1532_v12, %v2952_v28 }
 0x1c2   :  { %v1138_v54 = vmul.f32 %v1534_v19, %v2953_v35  ;;  %v1139_v63 = vmul.f32 %v1534_v19, %v2954_v6 }
 0x1c3   :  { %1233 = vst [vmem:[%s2687_s2 + $0x2d0] sm:$0xff] %v1135_v31  ;;  %1234 = vst [vmem:[%s2687_s2 + $0x2d8] sm:$0xff] %v1136_v24 }
 0x1c4   :  { %v1536_v10 = vpop.eup %1535  ;;  %1235 = vst [vmem:[%s2687_s2 + $0x2e0] sm:$0xff] %v1138_v54  ;;  %1236 = vst [vmem:[%s2687_s2 + $0x2e8] sm:$0xff] %v1139_v63 }
 0x1c5   :  { %v1141_v56 = vmul.f32 %v1536_v10, %v2293_v59  ;;  %v1142_v25 = vmul.f32 %v1536_v10, %v2297_v32 }
 0x1c7   :  { %1237 = vst [vmem:[%s2687_s2 + $0x2f0] sm:$0xff] %v1141_v56  ;;  %1238 = vst [vmem:[%s2687_s2 + $0x2f8] sm:$0xff] %v1142_v25 }
 0x1c8   :  { %1243 = vsyncpa [#allocation3], 1 }
 0x1c9   :  { %1244 = vsyncpa [#allocation5], 1 }

</bundles_post_ra>
